<compile_context>
chip_gen: v7x
topology: tpu7x:2x2x1
jax: 0.10.0
libtpu: 0.0.40
codegen_flags: <defaults>
</compile_context>

<pallas_src>
import functools

import jax
import jax.numpy as jnp
from jax import lax
from jax.experimental import pallas as pl
from jax.experimental.pallas import tpu as pltpu


def _ifm_kernel(en_ref, de_ref, descf_ref, mask_ref,
                w_stack_ref, b_stack_ref, b_out_ref, w_fus_ref,
                scal_ref, out_ref, *, W, Q, mxu_dtype):
    f32 = jnp.float32
    en = en_ref[0].astype(f32)        # (C_f, Np) encoder features (flat, padded)
    de = de_ref[0]                    # (C_a, Np) decoder features
    cf = en.shape[0]
    np_ = en.shape[1]

    alpha = scal_ref[0]
    beta = scal_ref[1]
    beta_gamma = scal_ref[2]          # beta * gamma, folded in the wrapper

    def mm(a, b):
        # MXU matmul: operands in mxu_dtype (f32 or bf16), f32 accumulation.
        return jnp.dot(a.astype(mxu_dtype), b.astype(mxu_dtype),
                       preferred_element_type=f32)

    # ---- one stacked matmul for all three `de`-consuming 1x1 convs ----
    fused = mm(w_stack_ref[...], de) + b_stack_ref[...]     # (Q + 2*C_f, Np) f32
    logits = fused[:Q]                                       # conv_de(de) + bias
    proj = fused[Q:Q + cf]                                   # LRM conv_1(de), no bias
    convd = fused[Q + cf:]                                   # self.conv(de) + bias

    # ---------------- SDM (w_out pre-folded into the descriptors) ----------------
    logits = logits - jnp.max(logits, axis=0, keepdims=True)
    e = jnp.exp(logits)
    attn = e / jnp.sum(e, axis=0, keepdims=True)             # exact divide
    feat_global = mm(descf_ref[0], attn) + b_out_ref[...]    # (C_f, Np)

    # ---------------- LRM (beta*gamma folded into cam) ----------------
    energy = lax.dot_general(proj.astype(mxu_dtype), en.astype(mxu_dtype),
                             (((1,), (1,)), ((), ())),
                             preferred_element_type=f32)     # (C_f, C_f)
    energy_new = jnp.max(energy, axis=-1, keepdims=True) - energy
    energy_new = energy_new - jnp.max(energy_new, axis=-1, keepdims=True)
    p = jnp.exp(energy_new)
    cam_scaled = p * (beta_gamma / jnp.sum(p, axis=-1, keepdims=True))  # exact divide
    lrm_scaled = mm(cam_scaled, en)                          # beta*gamma*(cam @ en)
    gate = jax.nn.sigmoid(feat_global)

    # pre = conv(de) + alpha*feat_global + beta*(gamma*(cam@en)*gate + en)
    pre = convd + alpha * feat_global + lrm_scaled * gate + beta * en   # (C_f, Np)

    # ---- 3x3 conv (padding=1, no bias) + ReLU: 9 accumulated tap matmuls ----
    # NOTE: tap masking guarantees valid output columns never read padded /
    # wrapped lanes; padded output columns carry garbage and are truncated by
    # the wrapper.  Do not weaken the masks without revisiting that invariant.
    masks = mask_ref[...]                                    # (6, Np) {row-1,row0,row+1,col-1,col0,col+1}
    acc = None
    for dy in range(3):
        for dx in range(3):
            off = (dy - 1) * W + (dx - 1)
            shifted = pre if off == 0 else pltpu.roll(pre, shift=(-off) % np_, axis=1)
            if dy == 1 and dx == 1:
                tap = shifted                                # centre tap: always valid
            elif dx == 1:
                tap = shifted * masks[dy:dy + 1, :]          # row mask only
            elif dy == 1:
                tap = shifted * masks[3 + dx:4 + dx, :]      # col mask only
            else:
                tap = shifted * (masks[dy:dy + 1, :] * masks[3 + dx:4 + dx, :])
            term = mm(w_fus_ref[dy * 3 + dx], tap)           # (C_f, Np)
            acc = term if acc is None else acc + term
    out_ref[0] = jnp.maximum(acc, 0.0).astype(out_ref.dtype)


def ifm_forward(input_en, input_de, descriptors, params,
                *, mxu_dtype=jnp.float32, out_dtype=None):
    """input_en: (B, C_f, H, W), input_de: (B, C_a, H, W), descriptors: (B, C_a, C_a//4)."""
    b, cf, h, w = input_en.shape
    ca = input_de.shape[1]
    q = ca // 4
    n = h * w
    n_pad = ((n + 127) // 128) * 128          # lane-dense blocks / stores
    if out_dtype is None:
        out_dtype = input_en.dtype
    f32 = jnp.float32

    # In-kernel sublane slices of the fused 1x1-conv output at rows Q and
    # Q + C_f are only tile-aligned when both are multiples of 8.
    assert q % 8 == 0 and cf % 8 == 0, \
        "IFM Pallas kernel requires c_atten//4 and fpn_dim to be multiples of 8"

    en_flat = input_en.reshape(b, cf, n)
    de_flat = input_de.reshape(b, ca, n)
    if n_pad != n:
        # TODO(synk): fold tail handling into the future N grid axis instead of
        # a wrapper-side pad (extra HBM round trip at production resolutions).
        pad = [(0, 0), (0, 0), (0, n_pad - n)]
        en_flat = jnp.pad(en_flat, pad)
        de_flat = jnp.pad(de_flat, pad)

    # w_out folded into descriptors: feat_global = (w_out @ desc) @ attn + b_out.
    desc_f = jnp.einsum('fc,bcq->bfq', params['w_out'].astype(f32),
                        descriptors.astype(f32),
                        precision=jax.lax.Precision.HIGHEST).astype(mxu_dtype)

    # Stacked de-consuming 1x1 convs: rows [0:Q] conv_de, [Q:Q+Cf] lrm.conv_1
    # (bias-free), [Q+Cf:] self.conv.
    w_stack = jnp.concatenate(
        [params['w_de'], params['w1'], params['w_conv']], axis=0).astype(mxu_dtype)
    b_stack = jnp.concatenate(
        [params['b_de'], jnp.zeros((cf,), f32), params['b_conv']]
    ).reshape(q + 2 * cf, 1).astype(f32)
    b_out = params['b_out'].reshape(cf, 1).astype(f32)
    # (C_out, C_in, 3, 3) -> (3, 3, C_out, C_in) -> (9, C_out, C_in); tap k=dy*3+dx.
    w_fus = params['w_fus'].transpose(2, 3, 0, 1).reshape(9, cf, cf).astype(mxu_dtype)
    scalars = jnp.stack([params['alpha'], params['beta'],
                         params['beta'] * params['gamma']]).astype(f32)

    # Grid-invariant boundary masks: 3 row-valid + 3 col-valid (1, Np) vectors.
    idx = jnp.arange(n_pad, dtype=jnp.int32)
    yy, xx = idx // w, idx % w
    row_ok = jnp.stack([(yy + s >= 0) & (yy + s < h) for s in (-1, 0, 1)])
    col_ok = jnp.stack([(xx + s >= 0) & (xx + s < w) for s in (-1, 0, 1)])
    masks = jnp.concatenate([row_ok, col_ok], axis=0).astype(f32)     # (6, n_pad)

    kernel = functools.partial(_ifm_kernel, W=w, Q=q, mxu_dtype=mxu_dtype)

    grid_spec = pltpu.PrefetchScalarGridSpec(
        num_scalar_prefetch=0,
        grid=(b,),
        in_specs=[
            pl.BlockSpec((1, cf, n_pad), lambda i: (i, 0, 0)),        # input_en
            pl.BlockSpec((1, ca, n_pad), lambda i: (i, 0, 0)),        # input_de
            pl.BlockSpec((1, cf, q), lambda i: (i, 0, 0)),            # w_out @ descriptors
            pl.BlockSpec((6, n_pad), lambda i: (0, 0)),               # boundary masks
            pl.BlockSpec((q + 2 * cf, ca), lambda i: (0, 0)),         # stacked 1x1 weights
            pl.BlockSpec((q + 2 * cf, 1), lambda i: (0, 0)),          # stacked 1x1 biases
            pl.BlockSpec((cf, 1), lambda i: (0, 0)),                  # out_conv bias
            pl.BlockSpec((9, cf, cf), lambda i: (0, 0, 0)),           # 3x3 conv per-tap weights
            pl.BlockSpec(memory_space=pltpu.MemorySpace.SMEM),        # alpha / beta / beta*gamma
        ],
        out_specs=pl.BlockSpec((1, cf, n_pad), lambda i: (i, 0, 0)),
    )

    out_flat = pl.pallas_call(
        kernel,
        out_shape=jax.ShapeDtypeStruct((b, cf, n_pad), out_dtype),
        grid_spec=grid_spec,
        compiler_params=pltpu.CompilerParams(
            dimension_semantics=("parallel",),
            vmem_limit_bytes=48 * 1024 * 1024),
    )(en_flat, de_flat, desc_f, masks, w_stack, b_stack, b_out, w_fus, scalars)

    return out_flat[:, :, :n].reshape(b, cf, h, w)


def ifm_reference(input_en, input_de, descriptors, params):
    """Pure-JAX NCHW reference mirroring the PyTorch forward (HIGHEST precision)."""
    hp = jax.lax.Precision.HIGHEST
    b, cf, h, w = input_en.shape
    ca = input_de.shape[1]
    n = h * w
    de_flat = input_de.reshape(b, ca, n)
    en_flat = input_en.reshape(b, cf, n)

    # SDM
    logits = (jnp.einsum('qc,bcn->bqn', params['w_de'], de_flat, precision=hp)
              + params['b_de'][None, :, None])
    attn = jax.nn.softmax(logits, axis=1)
    sdm_out = jnp.einsum('bcq,bqn->bcn', descriptors, attn, precision=hp)
    feat_global = (jnp.einsum('fc,bcn->bfn', params['w_out'], sdm_out, precision=hp)
                   + params['b_out'][None, :, None])
    # LRM
    proj = jnp.einsum('fc,bcn->bfn', params['w1'], de_flat, precision=hp)
    energy = jnp.einsum('bfn,bgn->bfg', proj, en_flat, precision=hp)
    energy_new = jnp.max(energy, axis=-1, keepdims=True) - energy
    cam = jax.nn.softmax(energy_new, axis=-1)
    lrm_feat = jnp.einsum('bfg,bgn->bfn', cam, en_flat, precision=hp)
    gate = jax.nn.sigmoid(feat_global)
    feat_local = lrm_feat * gate
    feat_local = params['gamma'] * feat_local + en_flat
    pre = (jnp.einsum('fc,bcn->bfn', params['w_conv'], de_flat, precision=hp)
           + params['b_conv'][None, :, None]
           + params['alpha'] * feat_global + params['beta'] * feat_local)
    pre_img = pre.reshape(b, cf, h, w)
    out = jax.lax.conv_general_dilated(
        pre_img, params['w_fus'], window_strides=(1, 1), padding='SAME',
        dimension_numbers=('NCHW', 'OIHW', 'NCHW'), precision=hp)
    return jnp.maximum(out, 0.0)


if __name__ == "__main__":
    key = jax.random.PRNGKey(0)
    B, FPN_DIM, C_ATTEN, H, W = 2, 32, 32, 16, 16
    Q = C_ATTEN // 4
    ks = jax.random.split(key, 11)

    input_en = jax.random.normal(ks[0], (B, FPN_DIM, H, W), jnp.float32)
    input_de = jax.random.normal(ks[1], (B, C_ATTEN, H, W), jnp.float32)
    descriptors = jax.random.normal(ks[2], (B, C_ATTEN, Q), jnp.float32)

    params = {
        'w_de':   jax.random.normal(ks[3], (Q, C_ATTEN), jnp.float32) * 0.1,
        'b_de':   jax.random.normal(ks[4], (Q,), jnp.float32) * 0.1,
        'w_out':  jax.random.normal(ks[5], (FPN_DIM, C_ATTEN), jnp.float32) * 0.1,
        'b_out':  jax.random.normal(ks[6], (FPN_DIM,), jnp.float32) * 0.1,
        'w1':     jax.random.normal(ks[7], (FPN_DIM, C_ATTEN), jnp.float32) * 0.1,
        'w_conv': jax.random.normal(ks[8], (FPN_DIM, C_ATTEN), jnp.float32) * 0.1,
        'b_conv': jax.random.normal(ks[9], (FPN_DIM,), jnp.float32) * 0.1,
        'w_fus':  jax.random.normal(ks[10], (FPN_DIM, FPN_DIM, 3, 3), jnp.float32) * 0.1,
        # nn.Parameter inits are gamma=0, alpha=0, beta=1; nonzero gamma/alpha
        # so the SDM/LRM branches are exercised numerically.
        'gamma': jnp.float32(0.25),
        'alpha': jnp.float32(0.5),
        'beta':  jnp.float32(1.0),
    }

    ref = ifm_reference(input_en, input_de, descriptors, params)

    # --- f32 MXU path: accuracy-validated (exact softmax denominators) ---
    out = ifm_forward(input_en, input_de, descriptors, params)
    out = jax.block_until_ready(out)
    assert out.shape == (B, FPN_DIM, H, W)
    assert jnp.allclose(out, ref, rtol=2e-3, atol=2e-3), \
        float(jnp.max(jnp.abs(out - ref)))

    # --- bf16-to-MXU path (production perf config for v5e/v6e/v7x) ---
    # Loose sanity tolerance only: bf16 operand rounding shifts the LRM
    # channel-attention softmax logits; tight accuracy is checked above in f32.
    out_bf16 = ifm_forward(input_en, input_de, descriptors, params,
                           mxu_dtype=jnp.bfloat16)
    out_bf16 = jax.block_until_ready(out_bf16)
    assert out_bf16.shape == (B, FPN_DIM, H, W)
    assert jnp.allclose(out_bf16, ref, rtol=1e-1, atol=2.5e-1), \
        float(jnp.max(jnp.abs(out_bf16 - ref)))

    print("KERNEL_OK")
</pallas_src>

<mosaic_0001>
module attributes {stable_mosaic.version = 11 : i64} {
  func.func @_ifm_kernel(%arg0: i32, %arg1: memref<1x32x256xf32, #tpu.memory_space<vmem>>, %arg2: memref<1x32x256xf32, #tpu.memory_space<vmem>>, %arg3: memref<1x32x8xf32, #tpu.memory_space<vmem>>, %arg4: memref<6x256xf32, #tpu.memory_space<vmem>>, %arg5: memref<72x32xf32, #tpu.memory_space<vmem>>, %arg6: memref<72x1xf32, #tpu.memory_space<vmem>>, %arg7: memref<32x1xf32, #tpu.memory_space<vmem>>, %arg8: memref<9x32x32xf32, #tpu.memory_space<vmem>>, %arg9: memref<3xf32, #tpu.memory_space<smem>>, %arg10: memref<1x32x256xf32, #tpu.memory_space<vmem>>) attributes {dimension_semantics = [#tpu.dimension_semantics<parallel>], iteration_bounds = array<i64: 2>, scalar_prefetch = 0 : i64, scratch_operands = 0 : i64, tpu.core_type = #tpu.core_type<tc>, window_params = [{transform_indices = @transform_0, window_bounds = array<i64: 1, 32, 256>}, {transform_indices = @transform_1, window_bounds = array<i64: 1, 32, 256>}, {transform_indices = @transform_2, window_bounds = array<i64: 1, 32, 8>}, {pipeline_mode = #tpu.pipeline_mode<synchronous>, transform_indices = @transform_3, window_bounds = array<i64: 6, 256>}, {pipeline_mode = #tpu.pipeline_mode<synchronous>, transform_indices = @transform_4, window_bounds = array<i64: 72, 32>}, {pipeline_mode = #tpu.pipeline_mode<synchronous>, transform_indices = @transform_5, window_bounds = array<i64: 72, 1>}, {pipeline_mode = #tpu.pipeline_mode<synchronous>, transform_indices = @transform_6, window_bounds = array<i64: 32, 1>}, {pipeline_mode = #tpu.pipeline_mode<synchronous>, transform_indices = @transform_7, window_bounds = array<i64: 9, 32, 32>}, {transform_indices = @transform_8, window_bounds = array<i64: 3>}, {transform_indices = @transform_9, window_bounds = array<i64: 1, 32, 256>}]} {
    %c0 = arith.constant 0 : index
    %c0_0 = arith.constant 0 : index
    %c0_1 = arith.constant 0 : index
    %0 = vector.load %arg1[%c0, %c0_0, %c0_1] : memref<1x32x256xf32, #tpu.memory_space<vmem>>, vector<1x32x256xf32>
    %1 = vector.shape_cast %0 : vector<1x32x256xf32> to vector<32x256xf32>
    %c0_2 = arith.constant 0 : index
    %c0_3 = arith.constant 0 : index
    %c0_4 = arith.constant 0 : index
    %2 = vector.load %arg2[%c0_2, %c0_3, %c0_4] : memref<1x32x256xf32, #tpu.memory_space<vmem>>, vector<1x32x256xf32>
    %3 = vector.shape_cast %2 : vector<1x32x256xf32> to vector<32x256xf32>
    %c0_5 = arith.constant 0 : index
    %4 = memref.load %arg9[%c0_5] : memref<3xf32, #tpu.memory_space<smem>>
    %c1 = arith.constant 1 : index
    %5 = memref.load %arg9[%c1] : memref<3xf32, #tpu.memory_space<smem>>
    %c2 = arith.constant 2 : index
    %6 = memref.load %arg9[%c2] : memref<3xf32, #tpu.memory_space<smem>>
    %c0_6 = arith.constant 0 : index
    %c0_7 = arith.constant 0 : index
    %7 = vector.load %arg5[%c0_6, %c0_7] : memref<72x32xf32, #tpu.memory_space<vmem>>, vector<72x32xf32>
    %cst = arith.constant dense<0.000000e+00> : vector<72x256xf32>
    %8 = tpu.matmul %7, %3, %cst {dimension_numbers = #tpu.dot_dimension_numbers<[1], [0], [0], [1], [0, 0, 1, 1], [], []>} : vector<72x32xf32>, vector<32x256xf32>, vector<72x256xf32> -> vector<72x256xf32>
    %c0_8 = arith.constant 0 : index
    %c0_9 = arith.constant 0 : index
    %9 = vector.load %arg6[%c0_8, %c0_9] : memref<72x1xf32, #tpu.memory_space<vmem>>, vector<72x1xf32>
    %10 = vector.broadcast %9 : vector<72x1xf32> to vector<72x256xf32>
    %11 = arith.addf %8, %10 : vector<72x256xf32>
    %12 = vector.extract_strided_slice %11 {offsets = [0, 0], sizes = [8, 256], strides = [1, 1]} : vector<72x256xf32> to vector<8x256xf32>
    %13 = vector.extract_strided_slice %11 {offsets = [8, 0], sizes = [32, 256], strides = [1, 1]} : vector<72x256xf32> to vector<32x256xf32>
    %14 = vector.extract_strided_slice %11 {offsets = [40, 0], sizes = [32, 256], strides = [1, 1]} : vector<72x256xf32> to vector<32x256xf32>
    %cst_10 = arith.constant dense<0xFF800000> : vector<256xf32>
    %15 = vector.multi_reduction <maximumf>, %12, %cst_10 [0] : vector<8x256xf32> to vector<256xf32>
    %16 = vector.shape_cast %15 : vector<256xf32> to vector<1x256xf32>
    %17 = vector.broadcast %16 : vector<1x256xf32> to vector<8x256xf32>
    %18 = arith.subf %12, %17 : vector<8x256xf32>
    %19 = math.exp %18 : vector<8x256xf32>
    %cst_11 = arith.constant dense<0.000000e+00> : vector<256xf32>
    %20 = vector.multi_reduction <add>, %19, %cst_11 [0] : vector<8x256xf32> to vector<256xf32>
    %21 = vector.shape_cast %20 : vector<256xf32> to vector<1x256xf32>
    %22 = vector.broadcast %21 : vector<1x256xf32> to vector<8x256xf32>
    %23 = arith.divf %19, %22 : vector<8x256xf32>
    %c0_12 = arith.constant 0 : index
    %c0_13 = arith.constant 0 : index
    %c0_14 = arith.constant 0 : index
    %24 = vector.load %arg3[%c0_12, %c0_13, %c0_14] : memref<1x32x8xf32, #tpu.memory_space<vmem>>, vector<1x32x8xf32>
    %25 = vector.shape_cast %24 : vector<1x32x8xf32> to vector<32x8xf32>
    %cst_15 = arith.constant dense<0.000000e+00> : vector<32x256xf32>
    %26 = tpu.matmul %25, %23, %cst_15 {dimension_numbers = #tpu.dot_dimension_numbers<[1], [0], [0], [1], [0, 0, 1, 1], [], []>} : vector<32x8xf32>, vector<8x256xf32>, vector<32x256xf32> -> vector<32x256xf32>
    %c0_16 = arith.constant 0 : index
    %c0_17 = arith.constant 0 : index
    %27 = vector.load %arg7[%c0_16, %c0_17] : memref<32x1xf32, #tpu.memory_space<vmem>>, vector<32x1xf32>
    %28 = vector.broadcast %27 : vector<32x1xf32> to vector<32x256xf32>
    %29 = arith.addf %26, %28 : vector<32x256xf32>
    %cst_18 = arith.constant dense<0.000000e+00> : vector<32x32xf32>
    %30 = tpu.matmul %13, %1, %cst_18 {dimension_numbers = #tpu.dot_dimension_numbers<[1], [1], [0], [0], [0, 0, 1, 0], [], []>} : vector<32x256xf32>, vector<32x256xf32>, vector<32x32xf32> -> vector<32x32xf32>
    %cst_19 = arith.constant dense<0xFF800000> : vector<32xf32>
    %31 = vector.multi_reduction <maximumf>, %30, %cst_19 [1] : vector<32x32xf32> to vector<32xf32>
    %32 = vector.shape_cast %31 : vector<32xf32> to vector<32x1xf32>
    %33 = vector.broadcast %32 : vector<32x1xf32> to vector<32x32xf32>
    %34 = arith.subf %33, %30 : vector<32x32xf32>
    %cst_20 = arith.constant dense<0xFF800000> : vector<32xf32>
    %35 = vector.multi_reduction <maximumf>, %34, %cst_20 [1] : vector<32x32xf32> to vector<32xf32>
    %36 = vector.shape_cast %35 : vector<32xf32> to vector<32x1xf32>
    %37 = vector.broadcast %36 : vector<32x1xf32> to vector<32x32xf32>
    %38 = arith.subf %34, %37 : vector<32x32xf32>
    %39 = math.exp %38 : vector<32x32xf32>
    %cst_21 = arith.constant dense<0.000000e+00> : vector<32xf32>
    %40 = vector.multi_reduction <add>, %39, %cst_21 [1] : vector<32x32xf32> to vector<32xf32>
    %41 = vector.shape_cast %40 : vector<32xf32> to vector<32x1xf32>
    %42 = vector.broadcast %6 : f32 to vector<32x1xf32>
    %43 = arith.divf %42, %41 : vector<32x1xf32>
    %44 = vector.broadcast %43 : vector<32x1xf32> to vector<32x32xf32>
    %45 = arith.mulf %39, %44 : vector<32x32xf32>
    %cst_22 = arith.constant dense<0.000000e+00> : vector<32x256xf32>
    %46 = tpu.matmul %45, %1, %cst_22 {dimension_numbers = #tpu.dot_dimension_numbers<[1], [0], [0], [1], [0, 0, 1, 1], [], []>} : vector<32x32xf32>, vector<32x256xf32>, vector<32x256xf32> -> vector<32x256xf32>
    %47 = arith.negf %29 : vector<32x256xf32>
    %48 = math.exp %47 : vector<32x256xf32>
    %cst_23 = arith.constant 1.000000e+00 : f32
    %49 = vector.broadcast %cst_23 : f32 to vector<32x256xf32>
    %50 = arith.addf %49, %48 : vector<32x256xf32>
    %51 = arith.divf %49, %50 : vector<32x256xf32>
    %52 = vector.broadcast %4 : f32 to vector<32x256xf32>
    %53 = arith.mulf %52, %29 : vector<32x256xf32>
    %54 = arith.addf %14, %53 : vector<32x256xf32>
    %55 = arith.mulf %46, %51 : vector<32x256xf32>
    %56 = arith.addf %54, %55 : vector<32x256xf32>
    %57 = vector.broadcast %5 : f32 to vector<32x256xf32>
    %58 = arith.mulf %57, %1 : vector<32x256xf32>
    %59 = arith.addf %56, %58 : vector<32x256xf32>
    %c0_24 = arith.constant 0 : index
    %c0_25 = arith.constant 0 : index
    %60 = vector.load %arg4[%c0_24, %c0_25] : memref<6x256xf32, #tpu.memory_space<vmem>>, vector<6x256xf32>
    %c17_i32 = arith.constant 17 : i32
    %61 = tpu.dynamic_rotate %59 by %c17_i32 dim 1 : vector<32x256xf32>, i32 -> vector<32x256xf32>
    %62 = vector.extract_strided_slice %60 {offsets = [0, 0], sizes = [1, 256], strides = [1, 1]} : vector<6x256xf32> to vector<1x256xf32>
    %63 = vector.extract_strided_slice %60 {offsets = [3, 0], sizes = [1, 256], strides = [1, 1]} : vector<6x256xf32> to vector<1x256xf32>
    %64 = arith.mulf %62, %63 : vector<1x256xf32>
    %65 = vector.broadcast %64 : vector<1x256xf32> to vector<32x256xf32>
    %66 = arith.mulf %61, %65 : vector<32x256xf32>
    %c0_26 = arith.constant 0 : index
    %c0_27 = arith.constant 0 : index
    %c0_28 = arith.constant 0 : index
    %67 = vector.load %arg8[%c0_26, %c0_27, %c0_28] : memref<9x32x32xf32, #tpu.memory_space<vmem>>, vector<1x32x32xf32>
    %68 = vector.shape_cast %67 : vector<1x32x32xf32> to vector<32x32xf32>
    %cst_29 = arith.constant dense<0.000000e+00> : vector<32x256xf32>
    %69 = tpu.matmul %68, %66, %cst_29 {dimension_numbers = #tpu.dot_dimension_numbers<[1], [0], [0], [1], [0, 0, 1, 1], [], []>} : vector<32x32xf32>, vector<32x256xf32>, vector<32x256xf32> -> vector<32x256xf32>
    %c16_i32 = arith.constant 16 : i32
    %70 = tpu.dynamic_rotate %59 by %c16_i32 dim 1 : vector<32x256xf32>, i32 -> vector<32x256xf32>
    %71 = vector.extract_strided_slice %60 {offsets = [0, 0], sizes = [1, 256], strides = [1, 1]} : vector<6x256xf32> to vector<1x256xf32>
    %72 = vector.broadcast %71 : vector<1x256xf32> to vector<32x256xf32>
    %73 = arith.mulf %70, %72 : vector<32x256xf32>
    %c1_30 = arith.constant 1 : index
    %c0_31 = arith.constant 0 : index
    %c0_32 = arith.constant 0 : index
    %74 = vector.load %arg8[%c1_30, %c0_31, %c0_32] : memref<9x32x32xf32, #tpu.memory_space<vmem>>, vector<1x32x32xf32>
    %75 = vector.shape_cast %74 : vector<1x32x32xf32> to vector<32x32xf32>
    %cst_33 = arith.constant dense<0.000000e+00> : vector<32x256xf32>
    %76 = tpu.matmul %75, %73, %cst_33 {dimension_numbers = #tpu.dot_dimension_numbers<[1], [0], [0], [1], [0, 0, 1, 1], [], []>} : vector<32x32xf32>, vector<32x256xf32>, vector<32x256xf32> -> vector<32x256xf32>
    %77 = arith.addf %69, %76 : vector<32x256xf32>
    %c15_i32 = arith.constant 15 : i32
    %78 = tpu.dynamic_rotate %59 by %c15_i32 dim 1 : vector<32x256xf32>, i32 -> vector<32x256xf32>
    %79 = vector.extract_strided_slice %60 {offsets = [0, 0], sizes = [1, 256], strides = [1, 1]} : vector<6x256xf32> to vector<1x256xf32>
    %80 = vector.extract_strided_slice %60 {offsets = [5, 0], sizes = [1, 256], strides = [1, 1]} : vector<6x256xf32> to vector<1x256xf32>
    %81 = arith.mulf %79, %80 : vector<1x256xf32>
    %82 = vector.broadcast %81 : vector<1x256xf32> to vector<32x256xf32>
    %83 = arith.mulf %78, %82 : vector<32x256xf32>
    %c2_34 = arith.constant 2 : index
    %c0_35 = arith.constant 0 : index
    %c0_36 = arith.constant 0 : index
    %84 = vector.load %arg8[%c2_34, %c0_35, %c0_36] : memref<9x32x32xf32, #tpu.memory_space<vmem>>, vector<1x32x32xf32>
    %85 = vector.shape_cast %84 : vector<1x32x32xf32> to vector<32x32xf32>
    %cst_37 = arith.constant dense<0.000000e+00> : vector<32x256xf32>
    %86 = tpu.matmul %85, %83, %cst_37 {dimension_numbers = #tpu.dot_dimension_numbers<[1], [0], [0], [1], [0, 0, 1, 1], [], []>} : vector<32x32xf32>, vector<32x256xf32>, vector<32x256xf32> -> vector<32x256xf32>
    %87 = arith.addf %77, %86 : vector<32x256xf32>
    %c1_i32 = arith.constant 1 : i32
    %88 = tpu.dynamic_rotate %59 by %c1_i32 dim 1 : vector<32x256xf32>, i32 -> vector<32x256xf32>
    %89 = vector.extract_strided_slice %60 {offsets = [3, 0], sizes = [1, 256], strides = [1, 1]} : vector<6x256xf32> to vector<1x256xf32>
    %90 = vector.broadcast %89 : vector<1x256xf32> to vector<32x256xf32>
    %91 = arith.mulf %88, %90 : vector<32x256xf32>
    %c3 = arith.constant 3 : index
    %c0_38 = arith.constant 0 : index
    %c0_39 = arith.constant 0 : index
    %92 = vector.load %arg8[%c3, %c0_38, %c0_39] : memref<9x32x32xf32, #tpu.memory_space<vmem>>, vector<1x32x32xf32>
    %93 = vector.shape_cast %92 : vector<1x32x32xf32> to vector<32x32xf32>
    %cst_40 = arith.constant dense<0.000000e+00> : vector<32x256xf32>
    %94 = tpu.matmul %93, %91, %cst_40 {dimension_numbers = #tpu.dot_dimension_numbers<[1], [0], [0], [1], [0, 0, 1, 1], [], []>} : vector<32x32xf32>, vector<32x256xf32>, vector<32x256xf32> -> vector<32x256xf32>
    %95 = arith.addf %87, %94 : vector<32x256xf32>
    %c4 = arith.constant 4 : index
    %c0_41 = arith.constant 0 : index
    %c0_42 = arith.constant 0 : index
    %96 = vector.load %arg8[%c4, %c0_41, %c0_42] : memref<9x32x32xf32, #tpu.memory_space<vmem>>, vector<1x32x32xf32>
    %97 = vector.shape_cast %96 : vector<1x32x32xf32> to vector<32x32xf32>
    %cst_43 = arith.constant dense<0.000000e+00> : vector<32x256xf32>
    %98 = tpu.matmul %97, %59, %cst_43 {dimension_numbers = #tpu.dot_dimension_numbers<[1], [0], [0], [1], [0, 0, 1, 1], [], []>} : vector<32x32xf32>, vector<32x256xf32>, vector<32x256xf32> -> vector<32x256xf32>
    %99 = arith.addf %95, %98 : vector<32x256xf32>
    %c255_i32 = arith.constant 255 : i32
    %100 = tpu.dynamic_rotate %59 by %c255_i32 dim 1 : vector<32x256xf32>, i32 -> vector<32x256xf32>
    %101 = vector.extract_strided_slice %60 {offsets = [5, 0], sizes = [1, 256], strides = [1, 1]} : vector<6x256xf32> to vector<1x256xf32>
    %102 = vector.broadcast %101 : vector<1x256xf32> to vector<32x256xf32>
    %103 = arith.mulf %100, %102 : vector<32x256xf32>
    %c5 = arith.constant 5 : index
    %c0_44 = arith.constant 0 : index
    %c0_45 = arith.constant 0 : index
    %104 = vector.load %arg8[%c5, %c0_44, %c0_45] : memref<9x32x32xf32, #tpu.memory_space<vmem>>, vector<1x32x32xf32>
    %105 = vector.shape_cast %104 : vector<1x32x32xf32> to vector<32x32xf32>
    %cst_46 = arith.constant dense<0.000000e+00> : vector<32x256xf32>
    %106 = tpu.matmul %105, %103, %cst_46 {dimension_numbers = #tpu.dot_dimension_numbers<[1], [0], [0], [1], [0, 0, 1, 1], [], []>} : vector<32x32xf32>, vector<32x256xf32>, vector<32x256xf32> -> vector<32x256xf32>
    %107 = arith.addf %99, %106 : vector<32x256xf32>
    %c241_i32 = arith.constant 241 : i32
    %108 = tpu.dynamic_rotate %59 by %c241_i32 dim 1 : vector<32x256xf32>, i32 -> vector<32x256xf32>
    %109 = vector.extract_strided_slice %60 {offsets = [2, 0], sizes = [1, 256], strides = [1, 1]} : vector<6x256xf32> to vector<1x256xf32>
    %110 = vector.extract_strided_slice %60 {offsets = [3, 0], sizes = [1, 256], strides = [1, 1]} : vector<6x256xf32> to vector<1x256xf32>
    %111 = arith.mulf %109, %110 : vector<1x256xf32>
    %112 = vector.broadcast %111 : vector<1x256xf32> to vector<32x256xf32>
    %113 = arith.mulf %108, %112 : vector<32x256xf32>
    %c6 = arith.constant 6 : index
    %c0_47 = arith.constant 0 : index
    %c0_48 = arith.constant 0 : index
    %114 = vector.load %arg8[%c6, %c0_47, %c0_48] : memref<9x32x32xf32, #tpu.memory_space<vmem>>, vector<1x32x32xf32>
    %115 = vector.shape_cast %114 : vector<1x32x32xf32> to vector<32x32xf32>
    %cst_49 = arith.constant dense<0.000000e+00> : vector<32x256xf32>
    %116 = tpu.matmul %115, %113, %cst_49 {dimension_numbers = #tpu.dot_dimension_numbers<[1], [0], [0], [1], [0, 0, 1, 1], [], []>} : vector<32x32xf32>, vector<32x256xf32>, vector<32x256xf32> -> vector<32x256xf32>
    %117 = arith.addf %107, %116 : vector<32x256xf32>
    %c240_i32 = arith.constant 240 : i32
    %118 = tpu.dynamic_rotate %59 by %c240_i32 dim 1 : vector<32x256xf32>, i32 -> vector<32x256xf32>
    %119 = vector.extract_strided_slice %60 {offsets = [2, 0], sizes = [1, 256], strides = [1, 1]} : vector<6x256xf32> to vector<1x256xf32>
    %120 = vector.broadcast %119 : vector<1x256xf32> to vector<32x256xf32>
    %121 = arith.mulf %118, %120 : vector<32x256xf32>
    %c7 = arith.constant 7 : index
    %c0_50 = arith.constant 0 : index
    %c0_51 = arith.constant 0 : index
    %122 = vector.load %arg8[%c7, %c0_50, %c0_51] : memref<9x32x32xf32, #tpu.memory_space<vmem>>, vector<1x32x32xf32>
    %123 = vector.shape_cast %122 : vector<1x32x32xf32> to vector<32x32xf32>
    %cst_52 = arith.constant dense<0.000000e+00> : vector<32x256xf32>
    %124 = tpu.matmul %123, %121, %cst_52 {dimension_numbers = #tpu.dot_dimension_numbers<[1], [0], [0], [1], [0, 0, 1, 1], [], []>} : vector<32x32xf32>, vector<32x256xf32>, vector<32x256xf32> -> vector<32x256xf32>
    %125 = arith.addf %117, %124 : vector<32x256xf32>
    %c239_i32 = arith.constant 239 : i32
    %126 = tpu.dynamic_rotate %59 by %c239_i32 dim 1 : vector<32x256xf32>, i32 -> vector<32x256xf32>
    %127 = vector.extract_strided_slice %60 {offsets = [2, 0], sizes = [1, 256], strides = [1, 1]} : vector<6x256xf32> to vector<1x256xf32>
    %128 = vector.extract_strided_slice %60 {offsets = [5, 0], sizes = [1, 256], strides = [1, 1]} : vector<6x256xf32> to vector<1x256xf32>
    %129 = arith.mulf %127, %128 : vector<1x256xf32>
    %130 = vector.broadcast %129 : vector<1x256xf32> to vector<32x256xf32>
    %131 = arith.mulf %126, %130 : vector<32x256xf32>
    %c8 = arith.constant 8 : index
    %c0_53 = arith.constant 0 : index
    %c0_54 = arith.constant 0 : index
    %132 = vector.load %arg8[%c8, %c0_53, %c0_54] : memref<9x32x32xf32, #tpu.memory_space<vmem>>, vector<1x32x32xf32>
    %133 = vector.shape_cast %132 : vector<1x32x32xf32> to vector<32x32xf32>
    %cst_55 = arith.constant dense<0.000000e+00> : vector<32x256xf32>
    %134 = tpu.matmul %133, %131, %cst_55 {dimension_numbers = #tpu.dot_dimension_numbers<[1], [0], [0], [1], [0, 0, 1, 1], [], []>} : vector<32x32xf32>, vector<32x256xf32>, vector<32x256xf32> -> vector<32x256xf32>
    %135 = arith.addf %125, %134 : vector<32x256xf32>
    %cst_56 = arith.constant 0.000000e+00 : f32
    %136 = vector.broadcast %cst_56 : f32 to vector<32x256xf32>
    %137 = arith.maximumf %135, %136 : vector<32x256xf32>
    %c0_57 = arith.constant 0 : index
    %c0_58 = arith.constant 0 : index
    %c0_59 = arith.constant 0 : index
    %138 = vector.load %arg10[%c0_57, %c0_58, %c0_59] : memref<1x32x256xf32, #tpu.memory_space<vmem>>, vector<1x32x256xf32>
    %139 = vector.shape_cast %138 : vector<1x32x256xf32> to vector<32x256xf32>
    %140 = vector.shape_cast %137 : vector<32x256xf32> to vector<1x32x256xf32>
    tpu.vector_store %arg10[%c0_57, %c0_58, %c0_59], %140 {strides = array<i32>} : memref<1x32x256xf32, #tpu.memory_space<vmem>>, vector<1x32x256xf32>,
    return
  }
  func.func @transform_0(%arg0: i32) -> (i32, i32, i32) {
    %c0_i32 = arith.constant 0 : i32
    %c0_i32_0 = arith.constant 0 : i32
    %c0_i32_1 = arith.constant 0 : i32
    return %arg0, %c0_i32, %c0_i32_0 : i32, i32, i32
  }
  func.func @transform_1(%arg0: i32) -> (i32, i32, i32) {
    %c0_i32 = arith.constant 0 : i32
    %c0_i32_0 = arith.constant 0 : i32
    %c0_i32_1 = arith.constant 0 : i32
    return %arg0, %c0_i32, %c0_i32_0 : i32, i32, i32
  }
  func.func @transform_2(%arg0: i32) -> (i32, i32, i32) {
    %c0_i32 = arith.constant 0 : i32
    %c0_i32_0 = arith.constant 0 : i32
    %c0_i32_1 = arith.constant 0 : i32
    return %arg0, %c0_i32, %c0_i32_0 : i32, i32, i32
  }
  func.func @transform_3(%arg0: i32) -> (i32, i32) {
    %c0_i32 = arith.constant 0 : i32
    %c0_i32_0 = arith.constant 0 : i32
    %c0_i32_1 = arith.constant 0 : i32
    return %c0_i32, %c0_i32_0 : i32, i32
  }
  func.func @transform_4(%arg0: i32) -> (i32, i32) {
    %c0_i32 = arith.constant 0 : i32
    %c0_i32_0 = arith.constant 0 : i32
    %c0_i32_1 = arith.constant 0 : i32
    return %c0_i32, %c0_i32_0 : i32, i32
  }
  func.func @transform_5(%arg0: i32) -> (i32, i32) {
    %c0_i32 = arith.constant 0 : i32
    %c0_i32_0 = arith.constant 0 : i32
    %c0_i32_1 = arith.constant 0 : i32
    return %c0_i32, %c0_i32_0 : i32, i32
  }
  func.func @transform_6(%arg0: i32) -> (i32, i32) {
    %c0_i32 = arith.constant 0 : i32
    %c0_i32_0 = arith.constant 0 : i32
    %c0_i32_1 = arith.constant 0 : i32
    return %c0_i32, %c0_i32_0 : i32, i32
  }
  func.func @transform_7(%arg0: i32) -> (i32, i32, i32) {
    %c0_i32 = arith.constant 0 : i32
    %c0_i32_0 = arith.constant 0 : i32
    %c0_i32_1 = arith.constant 0 : i32
    %c0_i32_2 = arith.constant 0 : i32
    return %c0_i32, %c0_i32_0, %c0_i32_1 : i32, i32, i32
  }
  func.func @transform_8(%arg0: i32) -> i32 {
    %c0_i32 = arith.constant 0 : i32
    %c0_i32_0 = arith.constant 0 : i32
    return %c0_i32 : i32
  }
  func.func @transform_9(%arg0: i32) -> (i32, i32, i32) {
    %c0_i32 = arith.constant 0 : i32
    %c0_i32_0 = arith.constant 0 : i32
    %c0_i32_1 = arith.constant 0 : i32
    return %arg0, %c0_i32, %c0_i32_0 : i32, i32, i32
  }
}

</mosaic_0001>

<bundles_post_ra>
// kernel: tpu_custom_call.1
= control target key start
LH: loop header
LB: loop body
LE: loop exit
PB: predicated region body
PF: predicated region fallthrough
CT: control target
= control target key end

     0   :  { %s4522_s0 = inlined_call_operand.hbm [shape: f32[2,32,256], index: 0, kind: input, shape index: {}]   ;;  %s4523_s1 = inlined_call_operand.hbm [shape: f32[2,32,256], index: 1, kind: input, shape index: {}]   ;;  %s4524_s2 = inlined_call_operand.vmem [shape: f32[2,32,8], index: 2, kind: input, shape index: {}]   ;;  %s4525_s3 = inlined_call_operand.vmem [shape: f32[6,256], index: 3, kind: input, shape index: {}]   ;;  %s4526_s4 = inlined_call_operand.vmem [shape: f32[72,32], index: 4, kind: input, shape index: {}]   ;;  %s4527_s5 = inlined_call_operand.vmem [shape: f32[72,1], index: 5, kind: input, shape index: {}]   ;;  %s4528_s6 = inlined_call_operand.vmem [shape: f32[32,1], index: 6, kind: input, shape index: {}]   ;;  %s4529_s7 = inlined_call_operand.vmem [shape: f32[9,32,32], index: 7, kind: input, shape index: {}]   ;;  %s4530_s8 = inlined_call_operand.vmem [shape: f32[3], index: 8, kind: input, shape index: {}]   ;;  %s4531_s9 = inlined_call_operand.hbm [shape: f32[2,32,256], index: 9, kind: output, shape index: {}]  }
   0x1   :  { %4540 = sst [smem:[#allocation18_spill]] %s4522_s0 }
   0x2   :  { %4541 = sst [smem:[#allocation19_spill]] %s4530_s8 }
   0x3   :  { %14 = vsyncpa [#allocation3], 0 }
   0x4   :  { %16 = vsyncpa [#allocation3 + $0x1], 0 }
   0x5   :  { %17 = vsyncpa [#allocation7], 0 }
   0x6   :  { %19 = vsyncpa [#allocation7 + $0x1], 0 }
   0x7   :  { %20 = vsyncpa [#allocation5], 0 }
   0x8   :  { %21 = vsyncpa [#allocation4], 0 }
   0x9   :  { %23 = vsyncpa [#allocation4 + $0x1], 0  ;;  %s3310_s30 = smov 0   ;;  %s3312_s10 = smov 0  }
   0xa   :  { %s3314_s11 = smov 0   ;;  %s3316_s12 = smov 0  }
   0xb LB: > { %4542 = sst [smem:[#allocation14_spill]] %s3237_s11  ;;  %s3331_s13 = sadd.s32 4294967295, %s3241_s12   ;;  %s3241_s12 = sphi %s3316_s12, %s4563_s12   ;;  %s3237_s11 = sphi %s3314_s11, %s4565_s11   ;;  %s3233_s10 = sphi %s3312_s10, %s4567_s10   ;;  %s3229_s30 = sphi %s3310_s30, %s4566_s30  }
   0xc   : > { %s2678_s14 = sadd.s32 4294967294, %s3241_s12   ;;  %s3335_s15 = sadd.s32 1, %s3241_s12  }
   0xd   : > { %4543 = sst [smem:[#allocation15_spill]] %s3335_s15  ;;  %s36_s16 = sadd.s32 1, %s3237_s11 }
   0xe   : > { %s33_s17 = ssub.s32 %s3241_s12, %s3335_s15  ;;  %p43_p0 = scmp.ne.s32.totalorder %s3237_s11, %s3233_s10 }
   0xf   : > { %p34_p1 = scmp.eq.s32.totalorder %s33_s17, 0  ;;  %p44_p2 = scmp.eq.s32.totalorder %s3241_s12, 0 }
  0x10   : > { %p49_p3 = scmp.ne.s32.totalorder %s3233_s10, %s3229_s30  ;;  %p4532_p4 = scmp.eq.s32.totalorder %s3331_s13, 0 }
  0x11   : > { %s3347_s18 = scalar_select %p34_p1, %s3237_s11, %s36_s16  }
  0x12   : > { %p3349_p5 = por %p44_p2, %p43_p0  ;;  %p3355_p6 = por %p4532_p4, %p49_p3 }
  0x13   : > { %4544 = sst [smem:[#allocation16_spill]] %s3347_s18  ;;  %p251_p7 = scmp.eq.s32.totalorder %s3331_s13, 1 }
  0x14   : > { %s4546_s20 = scalar_select %p3355_p6, 1, 0 }
  0x15   : > { %p257_p8 = scmp.eq.s32.totalorder %s2678_s14, 1  ;;  %p2679_p9 = scmp.ge.s32.totalorder %s3241_s12, 1 }
  0x16   : > { %p264_p10 = scmp.lt.s32.totalorder %s3241_s12, 3  ;;  %p3362_p11 = por %p251_p7, %p43_p0 }
  0x17   : > { %p3366_p12 = por %p257_p8, %p49_p3  ;;  %s4551_s8 = sld [smem:[#allocation19_spill]] }
  0x18   : > { %s4547_s21 = scalar_select %p3362_p11, 1, 0 }
  0x19   : > { %s4548_s22 = scalar_select %p3366_p12, 1, 0 }
  0x1a   : > { %p3370_p13 = pnand %p2679_p9, %p264_p10  ;;  %p2985_p2 = scmp.lt.s32.totalorder %s3241_s12, 2 }
  0x1b   : > { %4549 = sst [smem:[#allocation17_spill]] %s4548_s22  ;;  %s3388_s28 = sand.u32 1, %s3237_s11  }
  0x1c   : > { %p2969_p1 = pneg %p3370_p13  ;;  %p3392_p3 = pnand %p2985_p2, %p3349_p5 }
  0x1d   : > { %s292_s26 = sshll.u32 %s4551_s8, 4  ;;  %s4535_s14 = sshll.u32 %s3388_s28, 6  ;;  %s293_s26 = int_to_ptr.vmem [resolvable:$true] %s292_s26 }
  0x1e   : > { %p3383_p7 = pnand %p2969_p1, %p4532_p4  ;;  %s3092_s16 = scalar_lea.vmem %s293_s26, 16 }
  0x1f   : > { %p3093_p8 = scmp.ne.s32.totalorder %s293_s26, %s3092_s16  ;;  %p3100_p1 = scmp.lt.s32.totalorder %s293_s26, %s293_s26 }
  0x20   : > { %p3094_p9 = pneg %p3383_p7  ;;  %p3101_p4 = scmp.lt.s32.totalorder %s3092_s16, %s3092_s16 }
  0x22   : > { %p3095_p10 = pnand %p3094_p9, %p3093_p8  ;;  %p3102_p12 = por %p3101_p4, %p3100_p1 }
  0x24   : > { %p3096_p0 = pneg %p3095_p10 }
  0x26   : > { %p3103_p11 = pnand %p3102_p12, %p3096_p0 }
  0x28   : > { %3106 = shalt.err (!%p3103_p11)
}
  0x29   : > { %s3243_s17 = smov [#allocation8]   ;;  %s2795_s19 = sshll.u32 %s3241_s12, 10 }
  0x2a   : > { %2972 = dma.vmem_to_smem (!%p3383_p7), %s293_s26, 16, %s3243_s17, [#allocation5]  }
  0x2b   : > { %s307_s24 = scalar_lea.vmem [#allocation2], %s4535_s14  ;;  %s4554_s0 = sld [smem:[#allocation18_spill]] }
  0x2c   : > { %s314_s25 = sshll.u32 %s307_s24, 4  ;;  %s304_s27 = scalar_lea.sflag [#allocation3], %s3388_s28  ;;  %s3411_s25 = int_to_ptr.vmem [resolvable:$true] %s314_s25 }
  0x2d   : > { %p3109_p5 = pneg %p3392_p3 }
  0x31   : > { %s3409_s18 = scalar_lea.hbm %s4554_s0, %s2795_s19  ;;  %s3112_s8 = scalar_lea.hbm %s4554_s0, 2048 }
  0x32   : > { %s3107_s11 = scalar_lea.hbm %s3409_s18, 1024  ;;  %p3113_p0 = scmp.lt.u32.totalorder %s3409_s18, %s4554_s0 }
  0x33   : > { %p3108_p4 = scmp.ne.s32.totalorder %s3409_s18, %s3107_s11  ;;  %p3114_p2 = scmp.lt.u32.totalorder %s3112_s8, %s3107_s11 }
  0x34   : > { %p3116_p8 = scmp.lt.u32.totalorder %s3107_s11, %s3409_s18 }
  0x35   : > { %p3110_p11 = pnand %p3109_p5, %p3108_p4  ;;  %p3115_p7 = por %p3114_p2, %p3113_p0 }
  0x37   : > { %p3111_p12 = pneg %p3110_p11  ;;  %p3117_p9 = por %p3116_p8, %p3115_p7 }
  0x39   : > { %p3118_p10 = pnand %p3117_p9, %p3111_p12 }
  0x3b   : > { %3121 = shalt.err (!%p3118_p10)
}
  0x3c   : > { %s3122_s14 = scalar_lea.vmem %s3411_s25, 1024  ;;  %s3244_s26 = smov [#allocation2]  }
  0x3d   : > { %p3123_p1 = scmp.ne.s32.totalorder %s3411_s25, %s3122_s14  ;;  %s3127_s17 = sshll.u32 %s3244_s26, 4  ;;  %s3128_s17 = int_to_ptr.vmem [resolvable:$false] %s3127_s17 }
  0x3e   : > { %s3129_s24 = scalar_lea.vmem %s3128_s17, 2048  ;;  %p3130_p6 = scmp.lt.s32.totalorder %s3411_s25, %s3128_s17 }
  0x3f   : > { %p3125_p4 = pnand %p3123_p1, %p3109_p5  ;;  %p3131_p0 = scmp.lt.s32.totalorder %s3129_s24, %s3122_s14 }
  0x41   : > { %p3126_p11 = pneg %p3125_p4  ;;  %p3132_p2 = por %p3131_p0, %p3130_p6 }
  0x43   : > { %p3133_p7 = pnand %p3132_p2, %p3126_p11 }
  0x45   : > { %3136 = shalt.err (!%p3133_p7)
}
  0x46   : > { %s3245_s11 = smov 256   ;;  %s3246_s8 = smov 16  }
  0x47   : > { %2976 = dma.hbm_to_vmem [thread:$0]  (!%p3392_p3), %s3409_s18, 1024, %s3411_s25, %s304_s27, %s3245_s11, %s3245_s11, %s3246_s8  }
  0x48   : > { %s3449_s26 = scalar_lea.hbm %s4523_s1, %s2795_s19  ;;  %s4555_s17 = sshll.u32 %s3388_s28, 6 }
  0x49   : > { %s328_s24 = scalar_lea.vmem [#allocation6], %s4555_s17  ;;  %s325_s15 = scalar_lea.sflag [#allocation7], %s3388_s28 }
  0x4a   : > { %s335_s0 = sshll.u32 %s328_s24, 4  ;;  %s3137_s22 = scalar_lea.hbm %s3449_s26, 1024  ;;  %s3453_s0 = int_to_ptr.vmem [resolvable:$true] %s335_s0 }
  0x4b   : > { %p3138_p6 = scmp.ne.s32.totalorder %s3449_s26, %s3137_s22  ;;  %s3142_s19 = scalar_lea.hbm %s4523_s1, 2048 }
  0x4c   : > { %p3143_p9 = scmp.lt.u32.totalorder %s3449_s26, %s4523_s1  ;;  %p3144_p10 = scmp.lt.u32.totalorder %s3142_s19, %s3137_s22 }
  0x4d   : > { %p3140_p12 = pnand %p3138_p6, %p3109_p5  ;;  %p3146_p4 = scmp.lt.u32.totalorder %s3137_s22, %s3449_s26 }
  0x4e   : > { %p3145_p1 = por %p3144_p10, %p3143_p9 }
  0x4f   : > { %p3141_p8 = pneg %p3140_p12 }
  0x50   : > { %p3147_p11 = por %p3146_p4, %p3145_p1 }
  0x52   : > { %p3148_p0 = pnand %p3147_p11, %p3141_p8 }
  0x54   : > { %3151 = shalt.err (!%p3148_p0)
}
  0x55   : > { %s3152_s16 = scalar_lea.vmem %s3453_s0, 1024  ;;  %s3247_s17 = smov [#allocation6]  }
  0x56   : > { %p3153_p2 = scmp.ne.s32.totalorder %s3453_s0, %s3152_s16  ;;  %s3157_s24 = sshll.u32 %s3247_s17, 4  ;;  %s3158_s24 = int_to_ptr.vmem [resolvable:$false] %s3157_s24 }
  0x57   : > { %s3159_s18 = scalar_lea.vmem %s3158_s24, 2048  ;;  %p3160_p12 = scmp.lt.s32.totalorder %s3453_s0, %s3158_s24 }
  0x58   : > { %p3155_p7 = pnand %p3153_p2, %p3109_p5  ;;  %p3161_p9 = scmp.lt.s32.totalorder %s3159_s18, %s3152_s16 }
  0x5a   : > { %p3156_p6 = pneg %p3155_p7  ;;  %p3162_p10 = por %p3161_p9, %p3160_p12 }
  0x5c   : > { %p3163_p1 = pnand %p3162_p10, %p3156_p6 }
  0x5e   : > { %3166 = shalt.err (!%p3163_p1)
}
  0x5f   : > { %2979 = dma.hbm_to_vmem [thread:$0]  (!%p3392_p3), %s3449_s26, 1024, %s3453_s0, %s325_s15, %s3245_s11, %s3245_s11, %s3246_s8  }
  0x60   : > { %355 = sbr.rel (%p3370_p13) target bundleno = 1801 (0x709), region = 56  ;;  %s3487_s22 = sand.u32 (!%p3370_p13), 1, %s3233_s10  }
  0x61   : > { %s3490_s25 = sshll.u32 (!%p3370_p13), %s3487_s22, 6  ;;  %s358_s29 = scalar_lea.sflag (!%p3370_p13), [#allocation3], %s3487_s22 }
  0x62   : > { %s3494_s19 = scalar_lea.vmem (!%p3370_p13), [#allocation2], %s3490_s25  ;;  %p4556_p5 = scmp.ne.s32.totalorder (!%p3370_p13), %s4546_s20, 0 }
  0x67   : > { %3212 = dma.done.wait (%p4556_p5), %s358_s29, 1024  }
  0x68   : > { %3214 = vsyncadd (%p4556_p5), %s358_s29, 4294966272  ;;  %s367_s0 = scalar_lea.sflag [#allocation7], %s3487_s22  ;;  %s370_s15 = scalar_lea.vmem [#allocation6], %s3490_s25 }
  0x69   : > { %3216 = dma.done.wait (%p4556_p5), %s367_s0, 1024  }
  0x6a   : > { %3218 = vsyncadd (%p4556_p5), %s367_s0, 4294966272  ;;  %p4557_p13 = scmp.eq.s32.totalorder %s3331_s13, 0 }
  0x6c   : > { %3220 = dma.done.wait (%p4557_p13), [#allocation5], 16   ;;  %p4558_p3 = pmov %p4557_p13 }
  0x6e   : > { %3222 = vsyncadd (%p4558_p3), [#allocation5], 4294967280 }
  0x6f   : > { %379 = sfence }
  0x70   : > { %v434_v0 = vld [vmem:[%s370_s15 + $0x8] sm:$0xff]  ;;  %v436_v1 = vld [vmem:[%s370_s15 + $0x18] sm:$0xff]  ;;  %v433_v2 = vld [vmem:[%s370_s15] sm:$0xff]  ;;  %v3248_v7 = vmov 0.0   ;;  %v3249_v8 = vmov 0   ;;  %vm507_vm0 = vcmask 261120  }
  0x71   : > { %v2799_v3 = vpack.c.bf16 %v436_v1, %v434_v0  ;;  %v435_v4 = vld [vmem:[%s370_s15 + $0x10] sm:$0xff]  ;;  %v438_v5 = vld [vmem:[%s370_s15 + $0x28] sm:$0xff]  ;;  %v440_v6 = vld [vmem:[%s370_s15 + $0x38] sm:$0xff]  ;;  %599 = vmatprep.mubr.f32.mxu1 %v3248_v7  ;;  %3034 = vset.pattern.permute.xlu0 %v3249_v8  ;;  %p420_p8 = scmp.lt.s32.totalorder %s3331_s13, 1  ;;  %vm716_vm1 = vcmask 64512   ;;  %s441_s11 = sld [smem:[#allocation8]] }
  0x72   : > { %v2801_v9 = vpack.c.bf16 %v435_v4, %v433_v2  ;;  %v2803_v10 = vpack.c.bf16 %v440_v6, %v438_v5  ;;  %v437_v11 = vld [vmem:[%s370_s15 + $0x20] sm:$0xff]  ;;  %v439_v12 = vld [vmem:[%s370_s15 + $0x30] sm:$0xff]  ;;  %3035 = vset.pattern.permute.xlu1 %v3249_v8  ;;  %1600 = vmatprep.mubr.f32.mxu0 %v3248_v7  ;;  %v454_v16 = vld [vmem:[%s4527_s5 + $0x8] sm:$0xff]  ;;  %s2695_s8 = sld [smem:[#allocation8 + $0x1]]  ;;  %s3250_s26 = smov 15  }
  0x73   : > { %2800 = vmatprep.subr.bf16.mxu1 %v2799_v3  ;;  %v2805_v13 = vpack.c.bf16 %v439_v12, %v437_v11  ;;  %v453_v14 = vld [vmem:[%s4527_s5] sm:$0xff]  ;;  %v455_v15 = vld [vmem:[%s4527_s5 + $0x10] sm:$0xff]  ;;  %v456_v17 = vld [vmem:[%s4527_s5 + $0x18] sm:$0xff]  ;;  %s421_s0 = scalar_select %p420_p8, %s3331_s13, 1 }
  0x74   : > { %2802 = vmatpush1.bf16.msra.mxu1 %v2801_v9  ;;  %464 = vperm.xlu0 %3034, %v453_v14   ;;  %v444_v18 = vld [vmem:[%s4526_s4] sm:$0xff]  ;;  %v445_v20 = vld [vmem:[%s4526_s4 + $0x8] sm:$0xff]  ;;  %v446_v21 = vld [vmem:[%s4526_s4 + $0x10] sm:$0xff]  ;;  %s3251_s27 = smov 1   ;;  %s3252_s14 = smov 127  }
  0x75   : > { %2804 = vmatprep.subr.bf16.mxu1 %v2803_v10  ;;  %474 = vperm.xlu1 %3035, %v455_v15   ;;  %v457_v19 = vld [vmem:[%s4527_s5 + $0x20] sm:$0xff]  ;;  %v447_v22 = vld [vmem:[%s4526_s4 + $0x18] sm:$0xff]  ;;  %v449_v24 = vld [vmem:[%s4526_s4 + $0x28] sm:$0xff]  ;;  %s2797_s15 = sshll.u32 %s421_s0, 5  ;;  %s3253_s16 = smov 113  }
  0x76   : > { %v448_v23 = vld [vmem:[%s4526_s4 + $0x20] sm:$0xff]  ;;  %v450_v25 = vld [vmem:[%s4526_s4 + $0x30] sm:$0xff]  ;;  %v451_v26 = vld [vmem:[%s4526_s4 + $0x38] sm:$0xff]  ;;  %s424_s28 = scalar_lea.vmem %s4524_s2, %s2797_s15  ;;  %s3254_s17 = smov 16  }
  0x77   : > { %v452_v27 = vld [vmem:[%s4526_s4 + $0x40] sm:$0xff]  ;;  %v3591_v8 = vld [vmem:[%s3494_s19 + $0x8] sm:$0xff]  ;;  %v3594_v9 = vld [vmem:[%s3494_s19 + $0x18] sm:$0xff]  ;;  %s3255_s24 = smov 112   ;;  %s3256_s18 = smov 17  }
  0x78   : > { %2806 = vmatpush1.bf16.msra.mxu1 %v2805_v13  ;;  %469 = vperm.xlu0 %3034, %v454_v16   ;;  %v2807_v13 = vpack.c.bf16 %v3594_v9, %v3591_v8  ;;  %v688_v15 = vld [vmem:[%s424_s28] sm:$0xff]  ;;  %s3257_s29 = smov 111   ;;  %s4460_s15 = scalar_lea.vmem [#allocation9], %s3490_s25 }
  0x79   : > { %479 = vperm.xlu1 %3035, %v456_v17   ;;  %v3602_v16 = vld [vmem:[%s3494_s19] sm:$0xff]  ;;  %v3605_v17 = vld [vmem:[%s3494_s19 + $0x10] sm:$0xff]  ;;  %s2798_s25 = sshll.u32 %s3331_s13, 10  ;;  %s2558_s20 = sshll.u32 %s4460_s15, 4  ;;  %s4475_s20 = int_to_ptr.vmem [resolvable:$true] %s2558_s20 }
  0x7a   : > { %s2545_s13 = scalar_lea.sflag [#allocation4], %s3487_s22  ;;  %p4559_p11 = scmp.ne.s32.totalorder %s4547_s21, 0 }
  0x7b   : > { %2697 = vmatmul.mubr.msk.f32.vlgmr.msra.gmra.mrb[0].mxu1 %vm507_vm0, %v444_v18  ;;  %v3609_v18 = vld [vmem:[%s3494_s19 + $0x28] sm:$0xff] }
  0x7c   : > { %605 = vmatprep.mubr.f32.mxu1 %v3248_v7  ;;  %484 = vperm.xlu0 %3034, %v457_v19   ;;  %v3612_v19 = vld [vmem:[%s3494_s19 + $0x38] sm:$0xff] }
  0x7f   : > { %2698 = vmatmul.mubr.msk.f32.gmra.mrb[2].mxu1 %vm507_vm0, %v445_v20  ;;  %v689_v20 = vld [vmem:[%s424_s28 + $0x8] sm:$0xff] }
  0x80   : > { %611 = vmatprep.mubr.f32.mxu1 %v3248_v7 }
  0x83   : > { %2699 = vmatmul.mubr.msk.f32.gmra.mrb[4].mxu1 %vm507_vm0, %v446_v21  ;;  %v2809_v21 = vpack.c.bf16 %v3605_v17, %v3602_v16 }
  0x84   : > { %617 = vmatprep.mubr.f32.mxu1 %v3248_v7 }
  0x87   : > { %2700 = vmatmul.mubr.msk.f32.gmra.mrb[6].mxu1 %vm507_vm0, %v447_v22  ;;  %v2811_v22 = vpack.c.bf16 %v3612_v19, %v3609_v18 }
  0x88   : > { %623 = vmatprep.mubr.f32.mxu1 %v3248_v7 }
  0x8b   : > { %2701 = vmatmul.mubr.msk.f32.gmra.mrb[8].mxu1 %vm507_vm0, %v448_v23  ;;  %v690_v23 = vld [vmem:[%s424_s28 + $0x10] sm:$0xff] }
  0x8c   : > { %629 = vmatprep.mubr.f32.mxu1 %v3248_v7 }
  0x8f   : > { %2702 = vmatmul.mubr.msk.f32.gmra.mrb[10].mxu1 %vm507_vm0, %v449_v24  ;;  %v3622_v24 = vld [vmem:[%s3494_s19 + $0x20] sm:$0xff] }
  0x90   : > { %635 = vmatprep.mubr.f32.mxu1 %v3248_v7 }
  0x93   : > { %2703 = vmatmul.mubr.msk.f32.gmra.mrb[12].mxu1 %vm507_vm0, %v450_v25  ;;  %v3625_v25 = vld [vmem:[%s3494_s19 + $0x30] sm:$0xff]  ;;  %s2696_s19 = sld [smem:[#allocation8 + $0x2]] }
  0x94   : > { %641 = vmatprep.mubr.f32.mxu1 %v3248_v7 }
  0x97   : > { %2704 = vmatmul.mubr.msk.f32.gmra.mrb[14].mxu1 %vm507_vm0, %v451_v26  ;;  %v691_v26 = vld [vmem:[%s424_s28 + $0x18] sm:$0xff] }
  0x98   : > { %647 = vmatprep.mubr.f32.mxu1 %v3248_v7 }
  0x9b   : > { %2705 = vmatmul.mubr.msk.f32.gmra.mrb[16].mxu1 %vm507_vm0, %v452_v27 }
  0x9c   : > { %793 = vmatprep.mubr.f32.mxu1 %v3248_v7 }
  0xf3   : > { %v465_v28 = vpop.permute.xlu0 %464 }
  0xf7   : > { %v470_v27 = vpop.permute.xlu0 %469 }
 0x14e   : > { %v601_v29 = vpop.f32.mrb[0].mxu1 }
 0x14f   : > { %v602_v30 = vadd.f32 %v601_v29, %v465_v28  ;;  %v603_v31 = vpop.f32.mrb[1].mxu1 }
 0x150   : > { %v604_v32 = vadd.f32 %v603_v31, %v465_v28  ;;  %v2813_v28 = vpack.c.bf16 %v3625_v25, %v3622_v24 }
 0x151   : > { %v654_v33 = vrot.slane %v602_v30, 4 }
 0x152   : > { %v660_v34 = vrot.slane %v604_v32, 4  ;;  %v3572_v35 = vpop.f32.mrb[2].mxu1 }
 0x153   : > { %v655_v36 = vmax.f32 %v602_v30, %v654_v33  ;;  %v3574_v37 = vpop.f32.mrb[3].mxu1 }
 0x154   : > { %v661_v38 = vmax.f32 %v604_v32, %v660_v34  ;;  %v610_v29 = vadd.f32 %v3574_v37, %v470_v27  ;;  %v485_v37 = vpop.permute.xlu0 %484 }
 0x155   : > { %v656_v39 = vrot.slane %v655_v36, 2 }
 0x156   : > { %v662_v40 = vrot.slane %v661_v38, 2  ;;  %v3576_v41 = vpop.f32.mrb[4].mxu1 }
 0x157   : > { %v657_v42 = vmax.f32 %v655_v36, %v656_v39  ;;  %v3578_v43 = vpop.f32.mrb[5].mxu1 }
 0x158   : > { %v663_v44 = vmax.f32 %v661_v38, %v662_v40 }
 0x159   : > { %v658_v45 = vrot.slane %v657_v42, 1 }
 0x15a   : > { %v664_v46 = vrot.slane %v663_v44, 1  ;;  %v3580_v47 = vpop.f32.mrb[6].mxu1 }
 0x15b   : > { %v659_v48 = vmax.f32 %v657_v42, %v658_v45  ;;  %v3582_v49 = vpop.f32.mrb[7].mxu1 }
 0x15c   : > { %v665_v50 = vmax.f32 %v663_v44, %v664_v46 }
 0x15d   : > { %v666_v51 = vsub.f32 %v602_v30, %v659_v48  ;;  %v475_v30 = vpop.permute.xlu1 %474 }
 0x15e   : > { %v667_v52 = vsub.f32 %v604_v32, %v665_v50  ;;  %v3584_v53 = vpop.f32.mrb[8].mxu1  ;;  %v616_v31 = vadd.f32 %v3578_v43, %v475_v30  ;;  %v608_v32 = vadd.f32 %v3572_v35, %v470_v27  ;;  %v614_v34 = vadd.f32 %v3576_v41, %v475_v30 }
 0x15f   : > { %v668_v54 = vmul.f32 1.442695, %v666_v51  ;;  %v3586_v55 = vpop.f32.mrb[9].mxu1  ;;  %v626_v35 = vadd.f32 %v3584_v53, %v485_v37 }
 0x160   : > { %v670_v56 = vmul.f32 1.442695, %v667_v52  ;;  %v628_v39 = vadd.f32 %v3586_v55, %v485_v37 }
 0x161   : > { %3036 = vpow2.f32 %v668_v54  ;;  %v480_v33 = vpop.permute.xlu1 %479 }
 0x162   : > { %3038 = vpow2.f32 %v670_v56  ;;  %v622_v36 = vadd.f32 %v3582_v49, %v480_v33  ;;  %v620_v38 = vadd.f32 %v3580_v47, %v480_v33  ;;  %v3641_v40 = vpop.f32.mrb[10].mxu1 }
 0x163   : > { %v3643_v41 = vpop.f32.mrb[11].mxu1 }
 0x166   : > { %v3645_v42 = vpop.f32.mrb[12].mxu1 }
 0x167   : > { %v3647_v43 = vpop.f32.mrb[13].mxu1 }
 0x16a   : > { %v3649_v44 = vpop.f32.mrb[14].mxu1 }
 0x16b   : > { %v3037_v57 = vpop.eup %3036  ;;  %v3651_v45 = vpop.f32.mrb[15].mxu1 }
 0x16c   : > { %v3039_v58 = vpop.eup %3038  ;;  %v672_v59 = vrot.slane %v3037_v57, 4 }
 0x16d   : > { %v678_v60 = vrot.slane %v3039_v58, 4 }
 0x16e   : > { %v673_v61 = vadd.f32 %v3037_v57, %v672_v59  ;;  %v3653_v46 = vpop.f32.mrb[16].mxu1 }
 0x16f   : > { %v679_v62 = vadd.f32 %v3039_v58, %v678_v60  ;;  %v3655_v47 = vpop.f32.mrb[17].mxu1 }
 0x170   : > { %v674_v63 = vrot.slane %v673_v61, 2 }
 0x171   : > { %v680_v0 = vrot.slane %v679_v62, 2 }
 0x172   : > { %v675_v1 = vadd.f32 %v674_v63, %v673_v61 }
 0x173   : > { %v681_v2 = vadd.f32 %v680_v0, %v679_v62 }
 0x174   : > { %v676_v3 = vrot.slane %v675_v1, 1 }
 0x175   : > { %v682_v4 = vrot.slane %v681_v2, 1 }
 0x176   : > { %v677_v5 = vadd.f32 %v676_v3, %v675_v1 }
 0x177   : > { %v683_v6 = vadd.f32 %v682_v4, %v681_v2 }
 0x178   : > { %3040 = vrcp.f32 %v677_v5 }
 0x179   : > { %3042 = vrcp.f32 %v683_v6 }
 0x182   : > { %v3041_v10 = vpop.eup %3040 }
 0x183   : > { %v3043_v11 = vpop.eup %3042  ;;  %v685_v14 = vmul.f32 %v3041_v10, %v3037_v57 }
 0x184   : > { %v687_v12 = vmul.f32 %v3043_v11, %v3039_v58 }
 0x186   : > { %729 = vmatprep.subr.mxu1 %v687_v12 }
 0x187   : > { %730 = vmatpush1.msra.mxu1 %v685_v14 }
 0x188   : > { %2706 = vmatmul.mubr.msk.f32.vlgmr.msra.gmra.mrb[18].mxu1 %vm716_vm1, %v688_v15  ;;  %2808 = vmatprep.subr.bf16.mxu1 %v2807_v13 }
 0x189   : > { %799 = vmatprep.mubr.f32.mxu1 %v3248_v7 }
 0x18c   : > { %2707 = vmatmul.mubr.msk.f32.gmra.mrb[20].mxu1 %vm716_vm1, %v689_v20 }
 0x18d   : > { %805 = vmatprep.mubr.f32.mxu1 %v3248_v7 }
 0x18e   : > { %2810 = vmatpush1.bf16.xpose.msra.mxu1 %v2809_v21 }
 0x18f   : > { %2812 = vmatprep.subr.bf16.mxu1 %v2811_v22 }
 0x190   : > { %2708 = vmatmul.mubr.msk.f32.gmra.mrb[22].mxu1 %vm716_vm1, %v690_v23 }
 0x191   : > { %811 = vmatprep.mubr.f32.mxu1 %v3248_v7 }
 0x194   : > { %2709 = vmatmul.mubr.msk.f32.gmra.mrb[24].mxu1 %vm716_vm1, %v691_v26 }
 0x195   : > { %882 = vmatprep.mubr.f32.mxu1 %v610_v29 }
 0x196   : > { %2814 = vmatpush1.bf16.xpose.msra.mxu1 %v2813_v28 }
 0x197   : > { %2816 = vmatprep.subr.bf16.mxu1 %v2807_v13 }
 0x19d   : > { %883 = vmatmul.mubr.f32.vlgmr.msra.gmra.mrb[26].mxu1 %v608_v32 }
 0x19e   : > { %887 = vmatprep.mubr.f32.mxu1 %v616_v31  ;;  %2818 = vmatpush1.bf16.msra.mxu1 %v2809_v21 }
 0x19f   : > { %2820 = vmatprep.subr.bf16.mxu1 %v2811_v22 }
 0x1a1   : > { %888 = vmatmul.mubr.f32.gmra.mrb[28].mxu1 %v614_v34 }
 0x1a2   : > { %892 = vmatprep.mubr.f32.mxu1 %v622_v36  ;;  %2822 = vmatpush1.bf16.msra.mxu1 %v2813_v28 }
 0x1a5   : > { %893 = vmatmul.mubr.f32.gmra.mrb[30].mxu1 %v620_v38 }
 0x1a6   : > { %897 = vmatprep.mubr.f32.mxu1 %v628_v39 }
 0x1a9   : > { %898 = vmatmul.mubr.f32.gmra.mrb[32].mxu1 %v626_v35 }
 0x1aa   : > { %1044 = vmatprep.mubr.f32.mxu1 %v3248_v7 }
 0x25b   : > { %v3657_v48 = vpop.f32.mrb[18].mxu1 }
 0x25c   : > { %v3659_v49 = vpop.f32.mrb[19].mxu1 }
 0x25f   : > { %v3661_v50 = vpop.f32.mrb[20].mxu1 }
 0x260   : > { %v3663_v51 = vpop.f32.mrb[21].mxu1 }
 0x263   : > { %v3665_v52 = vpop.f32.mrb[22].mxu1 }
 0x264   : > { %v3667_v53 = vpop.f32.mrb[23].mxu1 }
 0x267   : > { %v3669_v54 = vpop.f32.mrb[24].mxu1 }
 0x268   : > { %v3671_v55 = vpop.f32.mrb[25].mxu1 }
 0x270   : > { %v884_v56 = vpop.f32.mrb[26].mxu1 }
 0x271   : > { %v886_v57 = vpop.f32.mrb[27].mxu1  ;;  %v903_v58 = vsel %vm507_vm0, %v884_v56, -inf }
 0x272   : > { %904 = vmax.xlane.f32.xlu1 %v903_v58 }
 0x274   : > { %v889_v59 = vpop.f32.mrb[28].mxu1 }
 0x275   : > { %v906_v60 = vsel %vm507_vm0, %v889_v59, -inf  ;;  %v891_v61 = vpop.f32.mrb[29].mxu1 }
 0x276   : > { %907 = vmax.xlane.f32.xlu0 %v906_v60  ;;  %v693_v61 = vld [vmem:[%s4528_s6 + $0x8] sm:$0xff] }
 0x278   : > { %v894_v62 = vpop.f32.mrb[30].mxu1 }
 0x279   : > { %v909_v63 = vsel %vm507_vm0, %v894_v62, -inf  ;;  %v896_v0 = vpop.f32.mrb[31].mxu1 }
 0x27a   : > { %910 = vmax.xlane.f32.xlu0 %v909_v63  ;;  %v694_v63 = vld [vmem:[%s4528_s6 + $0x10] sm:$0xff]  ;;  %v695_v0 = vld [vmem:[%s4528_s6 + $0x18] sm:$0xff] }
 0x27c   : > { %v899_v1 = vpop.f32.mrb[32].mxu1 }
 0x27d   : > { %v901_v2 = vpop.f32.mrb[33].mxu1  ;;  %v912_v3 = vsel %vm507_vm0, %v899_v1, -inf }
 0x27e   : > { %913 = vmax.xlane.f32.xlu1 %v912_v3  ;;  %v459_v2 = vld [vmem:[%s4527_s5 + $0x30] sm:$0xff]  ;;  %v460_v3 = vld [vmem:[%s4527_s5 + $0x38] sm:$0xff] }
 0x2ff   : > { %v905_v4 = vpop.xlane.xlu1 %904 }
 0x300   : > { %v915_v5 = vsub.f32 %v905_v4, %v884_v56  ;;  %v461_v4 = vld [vmem:[%s4527_s5 + $0x40] sm:$0xff] }
 0x302   : > { %v919_v6 = vsel %vm507_vm0, %v915_v5, -inf }
 0x303   : > { %v908_v10 = vpop.xlane.xlu0 %907  ;;  %920 = vmax.xlane.f32.xlu0 %v919_v6 }
 0x304   : > { %v916_v11 = vsub.f32 %v908_v10, %v889_v59 }
 0x306   : > { %v922_v12 = vsel %vm507_vm0, %v916_v11, -inf }
 0x307   : > { %v911_v13 = vpop.xlane.xlu0 %910  ;;  %923 = vmax.xlane.f32.xlu1 %v922_v12 }
 0x308   : > { %v917_v14 = vsub.f32 %v911_v13, %v894_v62  ;;  %v692_v62 = vld [vmem:[%s4528_s6] sm:$0xff] }
 0x30a   : > { %v925_v15 = vsel %vm507_vm0, %v917_v14, -inf }
 0x30b   : > { %926 = vmax.xlane.f32.xlu0 %v925_v15  ;;  %v914_v20 = vpop.xlane.xlu1 %913 }
 0x30c   : > { %v918_v21 = vsub.f32 %v914_v20, %v899_v1  ;;  %v458_v1 = vld [vmem:[%s4527_s5 + $0x28] sm:$0xff] }
 0x30e   : > { %v928_v22 = vsel %vm507_vm0, %v918_v21, -inf }
 0x30f   : > { %929 = vmax.xlane.f32.xlu1 %v928_v22 }
 0x390   : > { %v921_v23 = vpop.xlane.xlu0 %920 }
 0x391   : > { %v931_v26 = vsub.f32 %v915_v5, %v921_v23 }
 0x393   : > { %v935_v27 = vmul.f32 1.442695, %v931_v26 }
 0x394   : > { %v924_v28 = vpop.xlane.xlu1 %923 }
 0x395   : > { %3044 = vpow2.f32 %v935_v27  ;;  %v932_v29 = vsub.f32 %v916_v11, %v924_v28  ;;  %v955_v11 = vstv %s2696_s19  ;;  %s4473_s19 = scalar_lea.hbm %s4531_s9, %s2798_s25 }
 0x397   : > { %v937_v30 = vmul.f32 1.442695, %v932_v29 }
 0x398   : > { %v927_v31 = vpop.xlane.xlu0 %926 }
 0x399   : > { %3046 = vpow2.f32 %v937_v30  ;;  %v933_v32 = vsub.f32 %v917_v14, %v927_v31  ;;  %v1117_v31 = vstv %s441_s11  ;;  %s3167_s11 = scalar_lea.vmem %s4475_s20, 1024 }
 0x39a   : > { %p3168_p4 = scmp.ne.s32.totalorder %s4475_s20, %s3167_s11 }
 0x39b   : > { %v939_v33 = vmul.f32 1.442695, %v933_v32 }
 0x39c   : > { %v930_v34 = vpop.xlane.xlu1 %929  ;;  %p3169_p0 = pnand %p3168_p4, %p4559_p11 }
 0x39d   : > { %3048 = vpow2.f32 %v939_v33  ;;  %v934_v36 = vsub.f32 %v918_v21, %v930_v34 }
 0x39e   : > { %p3170_p2 = pneg %p3169_p0 }
 0x39f   : > { %v3045_v37 = vpop.eup %3044  ;;  %v941_v38 = vmul.f32 1.442695, %v934_v36 }
 0x3a0   : > { %v943_v39 = vsel %vm507_vm0, %v3045_v37, 0.0 }
 0x3a1   : > { %3050 = vpow2.f32 %v941_v38  ;;  %944 = vadd.xlane.f32.xlu0 %v943_v39 }
 0x3a3   : > { %v3047_v35 = vpop.eup %3046 }
 0x3a4   : > { %v946_v56 = vsel %vm507_vm0, %v3047_v35, 0.0 }
 0x3a5   : > { %947 = vadd.xlane.f32.xlu1 %v946_v56 }
 0x3a7   : > { %v3683_v57 = vpop.eup %3048 }
 0x3a8   : > { %v949_v58 = vsel %vm507_vm0, %v3683_v57, 0.0 }
 0x3a9   : > { %950 = vadd.xlane.f32.xlu0 %v949_v58 }
 0x3ab   : > { %v3687_v59 = vpop.eup %3050 }
 0x3ac   : > { %v952_v60 = vsel %vm507_vm0, %v3687_v59, 0.0 }
 0x3ad   : > { %953 = vadd.xlane.f32.xlu1 %v952_v60 }
 0x3be   : > { %703 = vperm.xlu1 %3035, %v693_v61  }
 0x3bf   : > { %698 = vperm.xlu0 %3034, %v692_v62  }
 0x3c2   : > { %708 = vperm.xlu1 %3035, %v694_v63  }
 0x3c3   : > { %713 = vperm.xlu0 %3034, %v695_v0  }
 0x3c6   : > { %489 = vperm.xlu1 %3035, %v458_v1  }
 0x3c7   : > { %494 = vperm.xlu0 %3034, %v459_v2  }
 0x3ca   : > { %499 = vperm.xlu1 %3035, %v460_v3  }
 0x3cb   : > { %504 = vperm.xlu0 %3034, %v461_v4  }
 0x42e   : > { %v945_v5 = vpop.xlane.xlu0 %944 }
 0x42f   : > { %3052 = vrcp.f32 %v945_v5 }
 0x432   : > { %v948_v6 = vpop.xlane.xlu1 %947 }
 0x433   : > { %3054 = vrcp.f32 %v948_v6 }
 0x436   : > { %v951_v10 = vpop.xlane.xlu0 %950 }
 0x437   : > { %3056 = vrcp.f32 %v951_v10 }
 0x439   : > { %v3053_v12 = vpop.eup %3052 }
 0x43a   : > { %v957_v13 = vmul.f32 %v3053_v12, %v955_v11  ;;  %v954_v14 = vpop.xlane.xlu1 %953 }
 0x43b   : > { %3058 = vrcp.f32 %v954_v14 }
 0x43c   : > { %v964_v15 = vmul.f32 %v3045_v37, %v957_v13 }
 0x43d   : > { %v3055_v20 = vpop.eup %3054 }
 0x43e   : > { %2710 = vmatmul.mubr.msk.f32.vlgmr.msra.gmra.mrb[34].mxu1 %vm507_vm0, %v964_v15  ;;  %v699_v21 = vpop.permute.xlu0 %698  ;;  %v704_v22 = vpop.permute.xlu1 %703  ;;  %v959_v23 = vmul.f32 %v3055_v20, %v955_v11 }
 0x43f   : > { %1050 = vmatprep.mubr.f32.mxu1 %v3248_v7  ;;  %v796_v28 = vadd.f32 %v3657_v48, %v699_v21  ;;  %v802_v32 = vadd.f32 %v3661_v50, %v704_v22  ;;  %v804_v33 = vadd.f32 %v3663_v51, %v704_v22  ;;  %v798_v36 = vadd.f32 %v3659_v49, %v699_v21 }
 0x440   : > { %v965_v26 = vmul.f32 %v3047_v35, %v959_v23 }
 0x441   : > { %v3057_v27 = vpop.eup %3056  ;;  %v1118_v38 = vmul.f32 %v1117_v31, %v796_v28  ;;  %v1120_v58 = vmul.f32 %v1117_v31, %v802_v32  ;;  %v1121_v60 = vmul.f32 %v1117_v31, %v804_v33  ;;  %v1119_v0 = vmul.f32 %v1117_v31, %v798_v36 }
 0x442   : > { %v714_v29 = vpop.permute.xlu0 %713  ;;  %2711 = vmatmul.mubr.msk.f32.gmra.mrb[36].mxu1 %vm507_vm0, %v965_v26  ;;  %v709_v30 = vpop.permute.xlu1 %708  ;;  %v961_v34 = vmul.f32 %v3057_v27, %v955_v11 }
 0x443   : > { %1056 = vmatprep.mubr.f32.mxu1 %v3248_v7  ;;  %v814_v39 = vadd.f32 %v3669_v54, %v714_v29  ;;  %v816_v48 = vadd.f32 %v3671_v55, %v714_v29  ;;  %v808_v61 = vadd.f32 %v3665_v52, %v709_v30  ;;  %v810_v51 = vadd.f32 %v3667_v53, %v709_v30 }
 0x444   : > { %v966_v49 = vmul.f32 %v3683_v57, %v961_v34 }
 0x445   : > { %v3059_v37 = vpop.eup %3058  ;;  %v1124_v2 = vmul.f32 %v1117_v31, %v814_v39  ;;  %v1125_v3 = vmul.f32 %v1117_v31, %v816_v48  ;;  %v1122_v5 = vmul.f32 %v1117_v31, %v808_v61  ;;  %v1123_v6 = vmul.f32 %v1117_v31, %v810_v51 }
 0x446   : > { %v495_v35 = vpop.permute.xlu0 %494  ;;  %v490_v56 = vpop.permute.xlu1 %489  ;;  %v963_v1 = vmul.f32 %v3059_v37, %v955_v11  ;;  %2712 = vmatmul.mubr.msk.f32.gmra.mrb[38].mxu1 %vm507_vm0, %v966_v49  ;;  %v2719_v20 = vmul.f32 -1.442695, %v810_v51  ;;  %v2720_v23 = vmul.f32 -1.442695, %v814_v39  ;;  %v2721_v26 = vmul.f32 -1.442695, %v816_v48 }
 0x447   : > { %v638_v50 = vadd.f32 %v3645_v42, %v495_v35  ;;  %v640_v62 = vadd.f32 %v3647_v43, %v495_v35  ;;  %v632_v63 = vadd.f32 %v3641_v40, %v490_v56  ;;  %v634_v55 = vadd.f32 %v3643_v41, %v490_v56  ;;  %1062 = vmatprep.mubr.f32.mxu1 %v3248_v7 }
 0x448   : > { %v967_v41 = vmul.f32 %v3687_v59, %v963_v1  ;;  %v2716_v59 = vmul.f32 -1.442695, %v802_v32  ;;  %v3757_v37 = vstv %s2695_s8  ;;  %s3258_s8 = smov [#allocation9]  }
 0x449   : > { %v3731_v54 = vadd.f32 %v1120_v58, %v638_v50  ;;  %v3734_v4 = vadd.f32 %v1121_v60, %v640_v62  ;;  %v3737_v42 = vadd.f32 %v1118_v38, %v632_v63  ;;  %v3739_v53 = vadd.f32 %v1119_v0, %v634_v55 }
 0x44a   : > { %v505_v52 = vpop.permute.xlu0 %504  ;;  %v500_v43 = vpop.permute.xlu1 %499  ;;  %2713 = vmatmul.mubr.msk.f32.gmra.mrb[40].mxu1 %vm507_vm0, %v967_v41  ;;  %v1152_v51 = vmul.f32 %v3757_v37, %v3591_v8  ;;  %v1154_v8 = vmul.f32 %v3757_v37, %v3594_v9 }
 0x44b   : > { %v650_v40 = vadd.f32 %v3653_v46, %v505_v52  ;;  %v652_v57 = vadd.f32 %v3655_v47, %v505_v52  ;;  %v644_v10 = vadd.f32 %v3649_v44, %v500_v43  ;;  %v646_v11 = vadd.f32 %v3651_v45, %v500_v43  ;;  %1346 = vmatprep.mubr.f32.mxu1 %v3248_v7 }
 0x44c   : > { %v2714_v46 = vmul.f32 -1.442695, %v796_v28  ;;  %v2715_v47 = vmul.f32 -1.442695, %v798_v36  ;;  %v2717_v44 = vmul.f32 -1.442695, %v804_v33 }
 0x44d   : > { %v3747_v12 = vadd.f32 %v1124_v2, %v650_v40  ;;  %v3749_v13 = vadd.f32 %v1125_v3, %v652_v57  ;;  %v3752_v14 = vadd.f32 %v1122_v5, %v644_v10  ;;  %v3754_v15 = vadd.f32 %v1123_v6, %v646_v11 }
 0x44e   : > { %3060 = vpow2.f32 %v2714_v46  ;;  %v2718_v45 = vmul.f32 -1.442695, %v808_v61  ;;  %v1151_v61 = vmul.f32 %v3757_v37, %v3602_v16  ;;  %v1153_v16 = vmul.f32 %v3757_v37, %v3605_v17 }
 0x44f   : > { %3062 = vpow2.f32 %v2715_v47  ;;  %v1156_v46 = vmul.f32 %v3757_v37, %v3609_v18  ;;  %v1158_v18 = vmul.f32 %v3757_v37, %v3612_v19 }
 0x450   : > { %3064 = vpow2.f32 %v2716_v59 }
 0x451   : > { %3066 = vpow2.f32 %v2717_v44 }
 0x452   : > { %3068 = vpow2.f32 %v2718_v45 }
 0x453   : > { %3070 = vpow2.f32 %v2719_v20 }
 0x454   : > { %3072 = vpow2.f32 %v2720_v23 }
 0x455   : > { %3074 = vpow2.f32 %v2721_v26 }
 0x458   : > { %v3061_v21 = vpop.eup %3060 }
 0x459   : > { %v3063_v22 = vpop.eup %3062  ;;  %v1093_v27 = vadd.f32 1.0, %v3061_v21 }
 0x45a   : > { %v3065_v29 = vpop.eup %3064  ;;  %v1094_v30 = vadd.f32 1.0, %v3063_v22 }
 0x45b   : > { %v3067_v31 = vpop.eup %3066  ;;  %3076 = vrcp.f32 %v1093_v27  ;;  %v1095_v28 = vadd.f32 1.0, %v3065_v29  ;;  %v1155_v27 = vmul.f32 %v3757_v37, %v3622_v24 }
 0x45c   : > { %3078 = vrcp.f32 %v1094_v30  ;;  %v1096_v32 = vadd.f32 1.0, %v3067_v31  ;;  %v3069_v33 = vpop.eup %3068  ;;  %v3912_v30 = vld [vmem:[%s4525_s3] sm:$0x3f]  ;;  %v3917_v31 = vld [vmem:[%s4525_s3 + $0x8] sm:$0x3f] }
 0x45d   : > { %3080 = vrcp.f32 %v1095_v28  ;;  %v3071_v34 = vpop.eup %3070  ;;  %v1097_v38 = vadd.f32 1.0, %v3069_v33 }
 0x45e   : > { %3082 = vrcp.f32 %v1096_v32  ;;  %v3073_v36 = vpop.eup %3072  ;;  %v1098_v48 = vadd.f32 1.0, %v3071_v34  ;;  %v1497_v34 = vrot.slane %v3912_v30, 5 }
 0x45f   : > { %v3075_v39 = vpop.eup %3074  ;;  %v1099_v62 = vadd.f32 1.0, %v3073_v36  ;;  %3084 = vrcp.f32 %v1097_v38  ;;  %v1498_v36 = vrot.slane %v3917_v31, 5 }
 0x460   : > { %v1100_v63 = vadd.f32 1.0, %v3075_v39  ;;  %3086 = vrcp.f32 %v1098_v48 }
 0x461   : > { %3088 = vrcp.f32 %v1099_v62 }
 0x462   : > { %3090 = vrcp.f32 %v1100_v63 }
 0x465   : > { %v3077_v35 = vpop.eup %3076 }
 0x466   : > { %v3079_v58 = vpop.eup %3078 }
 0x467   : > { %v3081_v55 = vpop.eup %3080 }
 0x468   : > { %v3083_v3 = vpop.eup %3082 }
 0x469   : > { %v3085_v9 = vpop.eup %3084 }
 0x511   : > { %v1046_v56 = vpop.f32.mrb[34].mxu1 }
 0x512   : > { %v1134_v60 = vmul.f32 %v3077_v35, %v1046_v56  ;;  %v1048_v50 = vpop.f32.mrb[35].mxu1  ;;  %v1501_v35 = vmul.f32 %v1497_v34, %v3912_v30  ;;  %v1502_v56 = vmul.f32 %v1498_v36, %v3917_v31 }
 0x513   : > { %v1135_v49 = vmul.f32 %v3079_v58, %v1048_v50 }
 0x514   : > { %v1142_v0 = vadd.f32 %v1134_v60, %v3737_v42 }
 0x515   : > { %v1143_v1 = vadd.f32 %v1135_v49, %v3739_v53  ;;  %v1052_v2 = vpop.f32.mrb[36].mxu1 }
 0x516   : > { %v3765_v52 = vadd.f32 %v1151_v61, %v1142_v0  ;;  %v1136_v43 = vmul.f32 %v3081_v55, %v1052_v2  ;;  %v1054_v40 = vpop.f32.mrb[37].mxu1 }
 0x517   : > { %v3771_v57 = vadd.f32 %v1152_v51, %v1143_v1  ;;  %v1137_v41 = vmul.f32 %v3083_v3, %v1054_v40 }
 0x518   : > { %v1144_v42 = vadd.f32 %v1136_v43, %v3731_v54  ;;  %1472 = vrot.lane.b32.xlu1 %v3765_v52, %s3250_s26  ;;  %v3087_v54 = vpop.eup %3086 }
 0x519   : > { %v1145_v53 = vadd.f32 %v1137_v41, %v3734_v4  ;;  %v1058_v6 = vpop.f32.mrb[38].mxu1  ;;  %v3089_v59 = vpop.eup %3088 }
 0x51a   : > { %v3777_v5 = vadd.f32 %v1153_v16, %v1144_v42  ;;  %v1138_v10 = vmul.f32 %v3085_v9, %v1058_v6  ;;  %v1060_v11 = vpop.f32.mrb[39].mxu1  ;;  %v3091_v20 = vpop.eup %3090 }
 0x51b   : > { %v3779_v17 = vadd.f32 %v1154_v8, %v1145_v53  ;;  %v1139_v4 = vmul.f32 %v3087_v54, %v1060_v11 }
 0x51c   : > { %1633 = vrot.lane.b32.xlu1 %v3765_v52, %s3251_s27  ;;  %1474 = vrot.lane.b32.xlu0 %v3777_v5, %s3250_s26  ;;  %v1146_v47 = vadd.f32 %v1138_v10, %v3752_v14 }
 0x51d   : > { %v1147_v44 = vadd.f32 %v1139_v4, %v3754_v15  ;;  %v1064_v45 = vpop.f32.mrb[40].mxu1 }
 0x51e   : > { %v1140_v21 = vmul.f32 %v3089_v59, %v1064_v45  ;;  %v1066_v22 = vpop.f32.mrb[41].mxu1  ;;  %v3811_v19 = vadd.f32 %v1155_v27, %v1146_v47 }
 0x51f   : > { %v3795_v23 = vadd.f32 %v1156_v46, %v1147_v44  ;;  %v1141_v14 = vmul.f32 %v3091_v20, %v1066_v22 }
 0x520   : > { %1902 = vrot.lane.b32.xlu1 %v3765_v52, %s3252_s14  ;;  %1635 = vrot.lane.b32.xlu0 %v3777_v5, %s3251_s27  ;;  %v1148_v26 = vadd.f32 %v1140_v21, %v3747_v12  ;;  %v1157_v12 = vmul.f32 %v3757_v37, %v3625_v25 }
 0x521   : > { %v1149_v15 = vadd.f32 %v1141_v14, %v3749_v13  ;;  %v1185_v13 = vlaneseq }
 0x522   : > { %v3819_v24 = vadd.f32 %v1157_v12, %v1148_v26 }
 0x523   : > { %v3805_v29 = vadd.f32 %v1158_v18, %v1149_v15  ;;  %v3923_v33 = vshrl.u32 %v1185_v13, 7  ;;  %v3929_v39 = vand.u32 127, %v1185_v13 }
 0x524   : > { %1480 = vrot.lane.b32.xlu1 %v3771_v57, %s3250_s26  ;;  %1904 = vrot.lane.b32.xlu0 %v3777_v5, %s3252_s14 }
 0x525   : > { %v3936_v48 = vsub.s32 0, %v3923_v33  ;;  %vm1488_vm2 = vcmp.lt.s32.totalorder %v3929_v39, 15  ;;  %v1660_v9 = vsub.s32 3, %v3923_v33  ;;  %vm1649_vm3 = vcmp.lt.s32.totalorder %v3929_v39, 1 }
 0x526   : > { %vm1918_vm4 = vcmp.lt.s32.totalorder %v3929_v39, 127  ;;  %vm1240_vm5 = vcmp.lt.s32.totalorder %v3929_v39, 16  ;;  %vm2073_vm6 = vcmp.lt.s32.totalorder %v3929_v39, 113  ;;  %vm2234_vm7 = vcmp.lt.s32.totalorder %v3929_v39, 112 }
 0x527   : > { %v1506_v61 = vrot.slane %v1501_v35, %v3936_v48  ;;  %v1510_v50 = vrot.slane %v1502_v56, %v3936_v48  ;;  %v1665_v11 = vrot.slane %v3917_v31, %v1660_v9  ;;  %v1661_v27 = vrot.slane %v3912_v30, %v1660_v9 }
 0x528   : > { %1641 = vrot.lane.b32.xlu1 %v3771_v57, %s3251_s27  ;;  %1482 = vrot.lane.b32.xlu0 %v3779_v17, %s3250_s26  ;;  %vm1187_vm8 = vcmp.lt.s32.totalorder %v3929_v39, 17  ;;  %vm2389_vm9 = vcmp.lt.s32.totalorder %v3929_v39, 111  ;;  %v2777_v39 = vld [vmem:[%s4529_s7 + $0xf8] sm:$0xff] }
 0x52c   : > { %1643 = vrot.lane.b32.xlu0 %v3779_v17, %s3251_s27  ;;  %1476 = vrot.lane.b32.xlu1 %v3811_v19, %s3250_s26 }
 0x530   : > { %1637 = vrot.lane.b32.xlu1 %v3811_v19, %s3251_s27  ;;  %1478 = vrot.lane.b32.xlu0 %v3819_v24, %s3250_s26 }
 0x534   : > { %1484 = vrot.lane.b32.xlu1 %v3795_v23, %s3250_s26  ;;  %1639 = vrot.lane.b32.xlu0 %v3819_v24, %s3251_s27 }
 0x538   : > { %1910 = vrot.lane.b32.xlu1 %v3771_v57, %s3252_s14  ;;  %1486 = vrot.lane.b32.xlu0 %v3805_v29, %s3250_s26  ;;  %s3171_s26 = sshll.u32 %s3258_s8, 4  ;;  %s3172_s26 = int_to_ptr.vmem [resolvable:$false] %s3171_s26 }
 0x539   : > { %p3174_p7 = scmp.lt.s32.totalorder %s4475_s20, %s3172_s26 }
 0x53c   : > { %1645 = vrot.lane.b32.xlu1 %v3795_v23, %s3251_s27  ;;  %1912 = vrot.lane.b32.xlu0 %v3779_v17, %s3252_s14 }
 0x540   : > { %1906 = vrot.lane.b32.xlu1 %v3811_v19, %s3252_s14  ;;  %1908 = vrot.lane.b32.xlu0 %v3819_v24, %s3252_s14 }
 0x544   : > { %1914 = vrot.lane.b32.xlu1 %v3795_v23, %s3252_s14  ;;  %2059 = vrot.lane.b32.xlu0 %v3777_v5, %s3253_s16 }
 0x548   : > { %2057 = vrot.lane.b32.xlu1 %v3765_v52, %s3253_s16  ;;  %1647 = vrot.lane.b32.xlu0 %v3805_v29, %s3251_s27  ;;  %s3173_s27 = scalar_lea.vmem %s3172_s26, 2048 }
 0x549   : > { %p3175_p6 = scmp.lt.s32.totalorder %s3173_s27, %s3167_s11 }
 0x54b   : > { %p3176_p12 = por %p3175_p6, %p3174_p7 }
 0x54c   : > { %2065 = vrot.lane.b32.xlu1 %v3771_v57, %s3253_s16  ;;  %2067 = vrot.lane.b32.xlu0 %v3779_v17, %s3253_s16 }
 0x54d   : > { %p3177_p9 = pnand %p3176_p12, %p3170_p2 }
 0x550   : > { %2061 = vrot.lane.b32.xlu1 %v3811_v19, %s3253_s16  ;;  %2063 = vrot.lane.b32.xlu0 %v3819_v24, %s3253_s16 }
 0x554   : > { %2069 = vrot.lane.b32.xlu1 %v3795_v23, %s3253_s16  ;;  %1226 = vrot.lane.b32.xlu0 %v3777_v5, %s3254_s17 }
 0x558   : > { %1224 = vrot.lane.b32.xlu1 %v3765_v52, %s3254_s17  ;;  %1234 = vrot.lane.b32.xlu0 %v3779_v17, %s3254_s17 }
 0x55c   : > { %1232 = vrot.lane.b32.xlu1 %v3771_v57, %s3254_s17  ;;  %2220 = vrot.lane.b32.xlu0 %v3777_v5, %s3255_s24 }
 0x560   : > { %2218 = vrot.lane.b32.xlu1 %v3765_v52, %s3255_s24  ;;  %2228 = vrot.lane.b32.xlu0 %v3779_v17, %s3255_s24 }
 0x564   : > { %2226 = vrot.lane.b32.xlu1 %v3771_v57, %s3255_s24  ;;  %1230 = vrot.lane.b32.xlu0 %v3819_v24, %s3254_s17 }
 0x568   : > { %1228 = vrot.lane.b32.xlu1 %v3811_v19, %s3254_s17  ;;  %1916 = vrot.lane.b32.xlu0 %v3805_v29, %s3252_s14 }
 0x56c   : > { %1236 = vrot.lane.b32.xlu1 %v3795_v23, %s3254_s17  ;;  %2224 = vrot.lane.b32.xlu0 %v3819_v24, %s3255_s24 }
 0x570   : > { %2222 = vrot.lane.b32.xlu1 %v3811_v19, %s3255_s24  ;;  %1171 = vrot.lane.b32.xlu0 %v3777_v5, %s3256_s18 }
 0x574   : > { %2230 = vrot.lane.b32.xlu1 %v3795_v23, %s3255_s24  ;;  %1179 = vrot.lane.b32.xlu0 %v3779_v17, %s3256_s18 }
 0x578   : > { %1169 = vrot.lane.b32.xlu1 %v3765_v52, %s3256_s18  ;;  %2071 = vrot.lane.b32.xlu0 %v3805_v29, %s3253_s16 }
 0x57c   : > { %1177 = vrot.lane.b32.xlu1 %v3771_v57, %s3256_s18  ;;  %2375 = vrot.lane.b32.xlu0 %v3777_v5, %s3257_s29 }
 0x580   : > { %2373 = vrot.lane.b32.xlu1 %v3765_v52, %s3257_s29  ;;  %2383 = vrot.lane.b32.xlu0 %v3779_v17, %s3257_s29 }
 0x584   : > { %2381 = vrot.lane.b32.xlu1 %v3771_v57, %s3257_s29  ;;  %1238 = vrot.lane.b32.xlu0 %v3805_v29, %s3254_s17 }
 0x588   : > { %1173 = vrot.lane.b32.xlu1 %v3811_v19, %s3256_s18  ;;  %2232 = vrot.lane.b32.xlu0 %v3805_v29, %s3255_s24 }
 0x58a   : > { %v1473_v25 = vpop.permute.xlu1 %1472 }
 0x58c   : > { %1181 = vrot.lane.b32.xlu1 %v3795_v23, %s3256_s18  ;;  %1175 = vrot.lane.b32.xlu0 %v3819_v24, %s3256_s18 }
 0x58e   : > { %v1634_v28 = vpop.permute.xlu1 %1633  ;;  %v1475_v32 = vpop.permute.xlu0 %1474 }
 0x590   : > { %2377 = vrot.lane.b32.xlu1 %v3811_v19, %s3257_s29  ;;  %2379 = vrot.lane.b32.xlu0 %v3819_v24, %s3257_s29 }
 0x592   : > { %v3927_v37 = vpop.permute.xlu1 %1902  ;;  %v1636_v38 = vpop.permute.xlu0 %1635 }
 0x594   : > { %2385 = vrot.lane.b32.xlu1 %v3795_v23, %s3257_s29  ;;  %1183 = vrot.lane.b32.xlu0 %v3805_v29, %s3256_s18 }
 0x596   : > { %v1481_v58 = vpop.permute.xlu1 %1480  ;;  %v3941_v60 = vpop.permute.xlu0 %1904 }
 0x597   : > { %v1489_v51 = vsel %vm1488_vm2, %v1473_v25, %v1481_v58  ;;  %v1493_v62 = vsel %vm1488_vm2, %v1481_v58, %v1473_v25  ;;  %v2734_v58 = vld [vmem:[%s4529_s7 + $0x40] sm:$0xff] }
 0x598   : > { %2387 = vrot.lane.b32.xlu0 %v3805_v29, %s3257_s29  ;;  %v1511_v1 = vmul.f32 %v1506_v61, %v1493_v62  ;;  %v1512_v3 = vmul.f32 %v1510_v50, %v1489_v51  ;;  %v2735_v51 = vld [vmem:[%s4529_s7 + $0x48] sm:$0xff] }
 0x59a   : > { %v1642_v49 = vpop.permute.xlu1 %1641  ;;  %v1483_v63 = vpop.permute.xlu0 %1482 }
 0x59b   : > { %v1490_v0 = vsel %vm1488_vm2, %v1475_v32, %v1483_v63  ;;  %v1494_v55 = vsel %vm1488_vm2, %v1483_v63, %v1475_v32  ;;  %v1650_v47 = vsel %vm1649_vm3, %v1634_v28, %v1642_v49  ;;  %v1654_v12 = vsel %vm1649_vm3, %v1642_v49, %v1634_v28 }
 0x59c   : > { %v1513_v2 = vmul.f32 %v1506_v61, %v1494_v55  ;;  %v1514_v43 = vmul.f32 %v1510_v50, %v1490_v0  ;;  %v1667_v25 = vmul.f32 %v1665_v11, %v1650_v47  ;;  %v1666_v56 = vmul.f32 %v1661_v27, %v1654_v12  ;;  %v2736_v55 = vld [vmem:[%s4529_s7 + $0x50] sm:$0xff] }
 0x59e   : > { %v1644_v16 = vpop.permute.xlu0 %1643  ;;  %v1477_v40 = vpop.permute.xlu1 %1476  ;;  %v2839_v8 = vpack.c.bf16 %v1514_v43, %v1512_v3  ;;  %v2841_v41 = vpack.c.bf16 %v1513_v2, %v1511_v1 }
 0x59f   : > { %v1651_v10 = vsel %vm1649_vm3, %v1636_v38, %v1644_v16  ;;  %v1655_v45 = vsel %vm1649_vm3, %v1644_v16, %v1636_v38 }
 0x5a0   : > { %2840 = vmatprep.subr.bf16.mxu0 %v2839_v8  ;;  %v1669_v20 = vmul.f32 %v1665_v11, %v1651_v10  ;;  %v1668_v38 = vmul.f32 %v1661_v27, %v1655_v45 }
 0x5a1   : > { %2842 = vmatpush1.bf16.msra.mxu0 %v2841_v41 }
 0x5a2   : > { %v1638_v42 = vpop.permute.xlu1 %1637  ;;  %v1479_v53 = vpop.permute.xlu0 %1478  ;;  %v2847_v35 = vpack.c.bf16 %v1669_v20, %v1667_v25  ;;  %v2849_v28 = vpack.c.bf16 %v1668_v38, %v1666_v56 }
 0x5a6   : > { %v1485_v6 = vpop.permute.xlu1 %1484  ;;  %v1640_v54 = vpop.permute.xlu0 %1639 }
 0x5a7   : > { %v1491_v46 = vsel %vm1488_vm2, %v1477_v40, %v1485_v6  ;;  %v1495_v4 = vsel %vm1488_vm2, %v1485_v6, %v1477_v40 }
 0x5a8   : > { %v1515_v18 = vmul.f32 %v1506_v61, %v1495_v4  ;;  %v1516_v14 = vmul.f32 %v1510_v50, %v1491_v46 }
 0x5aa   : > { %v3966_v59 = vpop.permute.xlu1 %1910  ;;  %v1487_v44 = vpop.permute.xlu0 %1486 }
 0x5ab   : > { %v1492_v21 = vsel %vm1488_vm2, %v1479_v53, %v1487_v44  ;;  %v1496_v22 = vsel %vm1488_vm2, %v1487_v44, %v1479_v53  ;;  %v2742_v44 = vld [vmem:[%s4529_s7 + $0x60] sm:$0xff] }
 0x5ac   : > { %v1517_v26 = vmul.f32 %v1506_v61, %v1496_v22  ;;  %v1518_v15 = vmul.f32 %v1510_v50, %v1492_v21  ;;  %v2859_v21 = vpack.c.bf16 %v3805_v29, %v3795_v23 }
 0x5ae   : > { %v1646_v13 = vpop.permute.xlu1 %1645  ;;  %v3977_v32 = vpop.permute.xlu0 %1912  ;;  %v2843_v34 = vpack.c.bf16 %v1518_v15, %v1516_v14  ;;  %v2845_v36 = vpack.c.bf16 %v1517_v26, %v1515_v18  ;;  %v2743_v14 = vld [vmem:[%s4529_s7 + $0x68] sm:$0xff]  ;;  %v2744_v15 = vld [vmem:[%s4529_s7 + $0x70] sm:$0xff] }
 0x5af   : > { %v1652_v63 = vsel %vm1649_vm3, %v1638_v42, %v1646_v13  ;;  %v1656_v0 = vsel %vm1649_vm3, %v1646_v13, %v1638_v42  ;;  %v2737_v42 = vld [vmem:[%s4529_s7 + $0x58] sm:$0xff]  ;;  %v1924_v46 = vsel %vm1918_vm4, %v3977_v32, %v3941_v60 }
 0x5b0   : > { %2844 = vmatprep.subr.bf16.mxu0 %v2843_v34  ;;  %v1670_v16 = vmul.f32 %v1661_v27, %v1656_v0  ;;  %v1671_v40 = vmul.f32 %v1665_v11, %v1652_v63  ;;  %v2083_v0 = vrot.slane %v3917_v31, 1 }
 0x5b1   : > { %2846 = vmatpush1.bf16.msra.mxu0 %v2845_v36  ;;  %v1919_v36 = vsel %vm1918_vm4, %v3927_v37, %v3966_v59 }
 0x5b2   : > { %v3982_v61 = vpop.permute.xlu1 %1906  ;;  %2848 = vmatprep.subr.bf16.mxu0 %v2847_v35  ;;  %v3984_v50 = vpop.permute.xlu0 %1908 }
 0x5b4   : > { %2738 = vmatmul.mubr.msk.f32.vlgmr.msra.gmra.mrb[0].mxu0 %vm507_vm0, %v2734_v58 }
 0x5b5   : > { %2850 = vmatpush1.bf16.msra.mxu0 %v2849_v28  ;;  %1606 = vmatprep.mubr.f32.mxu0 %v3248_v7 }
 0x5b6   : > { %v3991_v62 = vpop.permute.xlu1 %1914  ;;  %v3993_v49 = vpop.permute.xlu0 %2059 }
 0x5b8   : > { %2739 = vmatmul.mubr.msk.f32.gmra.mrb[2].mxu0 %vm507_vm0, %v2735_v51 }
 0x5b9   : > { %1612 = vmatprep.mubr.f32.mxu0 %v3248_v7 }
 0x5ba   : > { %v4004_v1 = vpop.permute.xlu1 %2057  ;;  %v1648_v2 = vpop.permute.xlu0 %1647 }
 0x5bb   : > { %v1653_v3 = vsel %vm1649_vm3, %v1640_v54, %v1648_v2  ;;  %v1657_v43 = vsel %vm1649_vm3, %v1648_v2, %v1640_v54  ;;  %v1929_v54 = vsub.s32 5, %v3923_v33 }
 0x5bc   : > { %v1672_v8 = vmul.f32 %v1661_v27, %v1657_v43  ;;  %v1673_v41 = vmul.f32 %v1665_v11, %v1653_v3  ;;  %2740 = vmatmul.mubr.msk.f32.gmra.mrb[4].mxu0 %vm507_vm0, %v2736_v55  ;;  %v2855_v11 = vpack.c.bf16 %v3779_v17, %v3771_v57  ;;  %v1923_v57 = vsel %vm1918_vm4, %v3966_v59, %v3927_v37  ;;  %v2750_v43 = vld [vmem:[%s4529_s7 + $0x80] sm:$0xff] }
 0x5bd   : > { %1618 = vmatprep.mubr.f32.mxu0 %v3248_v7  ;;  %v4037_v45 = vrot.slane %v3917_v31, %v1929_v54  ;;  %v2857_v17 = vpack.c.bf16 %v3777_v5, %v3765_v52  ;;  %v2861_v52 = vpack.c.bf16 %v3819_v24, %v3811_v19  ;;  %v1920_v19 = vsel %vm1918_vm4, %v3941_v60, %v3977_v32  ;;  %v2745_v32 = vld [vmem:[%s4529_s7 + $0x78] sm:$0xff] }
 0x5be   : > { %v2853_v53 = vpack.c.bf16 %v1672_v8, %v1670_v16  ;;  %v4015_v9 = vpop.permute.xlu1 %2065  ;;  %v4017_v6 = vpop.permute.xlu0 %2067  ;;  %v2851_v10 = vpack.c.bf16 %v1673_v41, %v1671_v40  ;;  %v4070_v24 = vrot.slane %v3912_v30, %v3936_v48  ;;  %v4074_v27 = vrot.slane %v3917_v31, %v3936_v48 }
 0x5bf   : > { %v1938_v20 = vmul.f32 %v4037_v45, %v1924_v46  ;;  %v1936_v26 = vmul.f32 %v4037_v45, %v1923_v57  ;;  %v1930_v12 = vrot.slane %v3912_v30, %v1929_v54  ;;  %v2082_v16 = vrot.slane %v3912_v30, 1 }
 0x5c0   : > { %2741 = vmatmul.mubr.msk.f32.gmra.mrb[6].mxu0 %vm507_vm0, %v2737_v42  ;;  %2852 = vmatprep.subr.bf16.mxu0 %v2851_v10  ;;  %v2087_v8 = vmul.f32 %v2083_v0, %v3917_v31  ;;  %v4113_v41 = vsub.s32 2, %v3923_v33  ;;  %v2751_v10 = vld [vmem:[%s4529_s7 + $0x88] sm:$0xff]  ;;  %v1921_v33 = vsel %vm1918_vm4, %v3982_v61, %v3991_v62  ;;  %v2079_v57 = vsel %vm2073_vm6, %v4017_v6, %v3993_v49 }
 0x5c1   : > { %1755 = vmatprep.mubr.f32.mxu0 %v3248_v7  ;;  %2854 = vmatpush1.bf16.msra.mxu0 %v2853_v53  ;;  %v2863_v5 = vpack.c.bf16 %v1938_v20, %v1936_v26  ;;  %v1937_v38 = vmul.f32 %v1930_v12, %v1920_v19  ;;  %v1935_v37 = vmul.f32 %v1930_v12, %v1919_v36 }
 0x5c2   : > { %v4029_v4 = vpop.permute.xlu1 %2061  ;;  %v4031_v47 = vpop.permute.xlu0 %2063  ;;  %2856 = vmatprep.subr.bf16.mxu0 %v2855_v11  ;;  %v2086_v54 = vmul.f32 %v2082_v16, %v3912_v30  ;;  %v1925_v11 = vsel %vm1918_vm4, %v3991_v62, %v3982_v61  ;;  %v2095_v46 = vrot.slane %v2087_v8, %v4113_v41  ;;  %v2752_v61 = vld [vmem:[%s4529_s7 + $0x90] sm:$0xff] }
 0x5c3   : > { %v2865_v40 = vpack.c.bf16 %v1937_v38, %v1935_v37  ;;  %v1940_v26 = vmul.f32 %v4037_v45, %v1925_v11  ;;  %v2760_v37 = vld [vmem:[%s4529_s7 + $0xb0] sm:$0xff]  ;;  %v1199_v11 = vrot.slane %v3917_v31, 3 }
 0x5c4   : > { %2746 = vmatmul.mubr.msk.f32.vlgmr.msra.gmra.mrb[0].mxu0 %vm507_vm0, %v2742_v44  ;;  %v2078_v44 = vsel %vm2073_vm6, %v4015_v9, %v4004_v1  ;;  %v2091_v62 = vrot.slane %v2086_v54, %v4113_v41  ;;  %v2099_v19 = vmul.f32 %v2095_v46, %v2079_v57 }
 0x5c5   : > { %2858 = vmatpush1.bf16.msra.mxu0 %v2857_v17  ;;  %1761 = vmatprep.mubr.f32.mxu0 %v3248_v7 }
 0x5c6   : > { %v4049_v22 = vpop.permute.xlu1 %2069  ;;  %v1227_v18 = vpop.permute.xlu0 %1226  ;;  %2860 = vmatprep.subr.bf16.mxu0 %v2859_v21 }
 0x5c8   : > { %2747 = vmatmul.mubr.msk.f32.gmra.mrb[2].mxu0 %vm507_vm0, %v2743_v14  ;;  %v1939_v14 = vmul.f32 %v1930_v12, %v1921_v33  ;;  %v1198_v33 = vrot.slane %v3912_v30, 3 }
 0x5c9   : > { %2862 = vmatpush1.bf16.msra.mxu0 %v2861_v52  ;;  %1767 = vmatprep.mubr.f32.mxu0 %v3248_v7 }
 0x5ca   : > { %v1225_v23 = vpop.permute.xlu1 %1224  ;;  %v1235_v29 = vpop.permute.xlu0 %1234  ;;  %2864 = vmatprep.subr.bf16.mxu0 %v2863_v5 }
 0x5cb   : > { %v1242_v25 = vsel %vm1240_vm5, %v1227_v18, %v1235_v29  ;;  %v1246_v13 = vsel %vm1240_vm5, %v1235_v29, %v1227_v18  ;;  %v2097_v29 = vmul.f32 %v2095_v46, %v2078_v44 }
 0x5cc   : > { %2748 = vmatmul.mubr.msk.f32.gmra.mrb[4].mxu0 %vm507_vm0, %v2744_v15  ;;  %v1259_v58 = vmul.f32 %v4070_v24, %v1246_v13  ;;  %v1260_v28 = vmul.f32 %v4074_v27, %v1242_v25  ;;  %v2075_v15 = vsel %vm2073_vm6, %v3993_v49, %v4017_v6 }
 0x5cd   : > { %1773 = vmatprep.mubr.f32.mxu0 %v3248_v7  ;;  %v2098_v13 = vmul.f32 %v2091_v62, %v2075_v15  ;;  %v2871_v49 = vpack.c.bf16 %v2099_v19, %v2097_v29 }
 0x5ce   : > { %v1233_v34 = vpop.permute.xlu1 %1232  ;;  %v4082_v60 = vpop.permute.xlu0 %2220 }
 0x5cf   : > { %v1241_v35 = vsel %vm1240_vm5, %v1225_v23, %v1233_v34  ;;  %v1245_v56 = vsel %vm1240_vm5, %v1233_v34, %v1225_v23  ;;  %v2074_v23 = vsel %vm2073_vm6, %v4004_v1, %v4015_v9  ;;  %v2753_v1 = vld [vmem:[%s4529_s7 + $0x98] sm:$0xff] }
 0x5d0   : > { %v1257_v51 = vmul.f32 %v4070_v24, %v1245_v56  ;;  %v1258_v63 = vmul.f32 %v4074_v27, %v1241_v35  ;;  %2749 = vmatmul.mubr.msk.f32.gmra.mrb[6].mxu0 %vm507_vm0, %v2745_v32  ;;  %v2758_v32 = vld [vmem:[%s4529_s7 + $0xa0] sm:$0xff]  ;;  %v2759_v56 = vld [vmem:[%s4529_s7 + $0xa8] sm:$0xff] }
 0x5d1   : > { %1869 = vmatprep.mubr.f32.mxu0 %v3248_v7 }
 0x5d2   : > { %v2825_v59 = vpack.c.bf16 %v1259_v58, %v1257_v51  ;;  %v4102_v55 = vpop.permute.xlu1 %2218  ;;  %v4104_v2 = vpop.permute.xlu0 %2228  ;;  %v2823_v3 = vpack.c.bf16 %v1260_v28, %v1258_v63  ;;  %v2076_v58 = vsel %vm2073_vm6, %v4029_v4, %v4049_v22  ;;  %v2080_v28 = vsel %vm2073_vm6, %v4049_v22, %v4029_v4 }
 0x5d3   : > { %v4214_v4 = vrot.slane %v3917_v31, %v4113_v41  ;;  %v2240_v16 = vsel %vm2234_vm7, %v4104_v2, %v4082_v60 }
 0x5d4   : > { %2824 = vmatprep.subr.bf16.mxu1 %v2823_v3  ;;  %2754 = vmatmul.mubr.msk.f32.vlgmr.msra.gmra.mrb[0].mxu0 %vm507_vm0, %v2750_v43  ;;  %v2101_v43 = vmul.f32 %v2095_v46, %v2080_v28 }
 0x5d5   : > { %2826 = vmatpush1.bf16.msra.mxu1 %v2825_v59  ;;  %2866 = vmatpush1.bf16.msra.mxu0 %v2865_v40  ;;  %v2100_v59 = vmul.f32 %v2091_v62, %v2076_v58 }
 0x5d6   : > { %v4116_v42 = vpop.permute.xlu1 %2226  ;;  %v4118_v53 = vpop.permute.xlu0 %1230  ;;  %1875 = vmatprep.mubr.f32.mxu0 %v3248_v7 }
 0x5d7   : > { %v2239_v51 = vsel %vm2234_vm7, %v4116_v42, %v4102_v55 }
 0x5d8   : > { %2755 = vmatmul.mubr.msk.f32.gmra.mrb[2].mxu0 %vm507_vm0, %v2751_v10  ;;  %v2235_v10 = vsel %vm2234_vm7, %v4102_v55, %v4116_v42  ;;  %v2252_v54 = vmul.f32 %v4214_v4, %v2239_v51  ;;  %v2761_v55 = vld [vmem:[%s4529_s7 + $0xb8] sm:$0xff] }
 0x5d9   : > { %1881 = vmatprep.mubr.f32.mxu0 %v3248_v7 }
 0x5da   : > { %v4144_v17 = vpop.permute.xlu1 %1228  ;;  %v1917_v20 = vpop.permute.xlu0 %1916 }
 0x5db   : > { %v1922_v21 = vsel %vm1918_vm4, %v3984_v50, %v1917_v20  ;;  %v1926_v18 = vsel %vm1918_vm4, %v1917_v20, %v3984_v50  ;;  %v2236_v20 = vsel %vm2234_vm7, %v4082_v60, %v4104_v2  ;;  %v2766_v60 = vld [vmem:[%s4529_s7 + $0xc0] sm:$0xff] }
 0x5dc   : > { %v1941_v52 = vmul.f32 %v1930_v12, %v1922_v21  ;;  %v1942_v5 = vmul.f32 %v4037_v45, %v1926_v18  ;;  %2756 = vmatmul.mubr.msk.f32.gmra.mrb[4].mxu0 %vm507_vm0, %v2752_v61  ;;  %v2096_v45 = vmul.f32 %v2091_v62, %v2074_v23  ;;  %v2254_v61 = vmul.f32 %v4214_v4, %v2240_v16 }
 0x5dd   : > { %1887 = vmatprep.mubr.f32.mxu0 %v3248_v7  ;;  %v4251_v21 = vmul.f32 %v1198_v33, %v3912_v30  ;;  %v1203_v18 = vmul.f32 %v1199_v11, %v3917_v31 }
 0x5de   : > { %v2869_v50 = vpack.c.bf16 %v1941_v52, %v1939_v14  ;;  %v4168_v25 = vpop.permute.xlu1 %1236  ;;  %v4170_v12 = vpop.permute.xlu0 %2224  ;;  %v2867_v9 = vpack.c.bf16 %v1942_v5, %v1940_v26  ;;  %v2873_v36 = vpack.c.bf16 %v2098_v13, %v2096_v45  ;;  %v2879_v14 = vpack.c.bf16 %v2254_v61, %v2252_v54 }
 0x5df   : > { %v1247_v31 = vsel %vm1240_vm5, %v4168_v25, %v4144_v17  ;;  %v4273_v23 = vrot.slane %v4251_v21, %v3936_v48  ;;  %v4276_v29 = vrot.slane %v1203_v18, %v3936_v48  ;;  %v2767_v48 = vld [vmem:[%s4529_s7 + $0xc8] sm:$0xff]  ;;  %v2401_v33 = vrot.slane %v4251_v21, %v4113_v41 }
 0x5e0   : > { %2868 = vmatprep.subr.bf16.mxu0 %v2867_v9  ;;  %2757 = vmatmul.mubr.msk.f32.gmra.mrb[6].mxu0 %vm507_vm0, %v2753_v1  ;;  %v1261_v19 = vmul.f32 %v4070_v24, %v1247_v31 }
 0x5e1   : > { %2870 = vmatpush1.bf16.msra.mxu0 %v2869_v50  ;;  %2024 = vmatprep.mubr.f32.mxu0 %v3248_v7 }
 0x5e2   : > { %v4177_v6 = vpop.permute.xlu1 %2222  ;;  %v4179_v34 = vpop.permute.xlu0 %1171  ;;  %2872 = vmatprep.subr.bf16.mxu0 %v2871_v49 }
 0x5e4   : > { %2762 = vmatmul.mubr.msk.f32.vlgmr.msra.gmra.mrb[0].mxu0 %vm507_vm0, %v2758_v32 }
 0x5e5   : > { %2874 = vmatpush1.bf16.msra.mxu0 %v2873_v36  ;;  %2030 = vmatprep.mubr.f32.mxu0 %v3248_v7 }
 0x5e6   : > { %v4186_v38 = vpop.permute.xlu1 %2230  ;;  %v4188_v35 = vpop.permute.xlu0 %1179 }
 0x5e7   : > { %v2237_v50 = vsel %vm2234_vm7, %v4177_v6, %v4186_v38  ;;  %v2241_v9 = vsel %vm2234_vm7, %v4186_v38, %v4177_v6  ;;  %v1189_v45 = vsel %vm1187_vm8, %v4179_v34, %v4188_v35  ;;  %v1193_v58 = vsel %vm1187_vm8, %v4188_v35, %v4179_v34  ;;  %v2768_v34 = vld [vmem:[%s4529_s7 + $0xd0] sm:$0xff] }
 0x5e8   : > { %2763 = vmatmul.mubr.msk.f32.gmra.mrb[2].mxu0 %vm507_vm0, %v2759_v56  ;;  %v1215_v28 = vmul.f32 %v4276_v29, %v1189_v45  ;;  %v2256_v35 = vmul.f32 %v4214_v4, %v2241_v9  ;;  %v2725_v45 = vld [vmem:[%s4529_s7 + $0x38] sm:$0xff] }
 0x5e9   : > { %2036 = vmatprep.mubr.f32.mxu0 %v3248_v7 }
 0x5ea   : > { %v1170_v63 = vpop.permute.xlu1 %1169  ;;  %v2072_v0 = vpop.permute.xlu0 %2071 }
 0x5eb   : > { %v2077_v22 = vsel %vm2073_vm6, %v4031_v47, %v2072_v0  ;;  %v2081_v3 = vsel %vm2073_vm6, %v2072_v0, %v4031_v47  ;;  %v4236_v47 = vrot.slane %v3912_v30, %v4113_v41  ;;  %v1243_v30 = vsel %vm1240_vm5, %v4144_v17, %v4168_v25 }
 0x5ec   : > { %v2102_v40 = vmul.f32 %v2091_v62, %v2077_v22  ;;  %v2103_v8 = vmul.f32 %v2095_v46, %v2081_v3  ;;  %2764 = vmatmul.mubr.msk.f32.gmra.mrb[4].mxu0 %vm507_vm0, %v2760_v37  ;;  %v1262_v17 = vmul.f32 %v4074_v27, %v1243_v30 }
 0x5ed   : > { %2042 = vmatprep.mubr.f32.mxu0 %v3248_v7  ;;  %v2251_v62 = vmul.f32 %v4236_v47, %v2235_v10  ;;  %v2253_v26 = vmul.f32 %v4236_v47, %v2236_v20  ;;  %v2255_v56 = vmul.f32 %v4236_v47, %v2237_v50 }
 0x5ee   : > { %v2877_v44 = vpack.c.bf16 %v2102_v40, %v2100_v59  ;;  %v1178_v57 = vpop.permute.xlu1 %1177  ;;  %v4238_v46 = vpop.permute.xlu0 %2375  ;;  %v2875_v42 = vpack.c.bf16 %v2103_v8, %v2101_v43  ;;  %v1214_v8 = vmul.f32 %v4273_v23, %v1193_v58 }
 0x5ef   : > { %v2881_v2 = vpack.c.bf16 %v2253_v26, %v2251_v62  ;;  %v1188_v15 = vsel %vm1187_vm8, %v1170_v63, %v1178_v57  ;;  %v1192_v32 = vsel %vm1187_vm8, %v1178_v57, %v1170_v63  ;;  %v2723_v62 = vld [vmem:[%s4529_s7 + $0x28] sm:$0xff] }
 0x5f0   : > { %2876 = vmatprep.subr.bf16.mxu0 %v2875_v42  ;;  %2765 = vmatmul.mubr.msk.f32.gmra.mrb[6].mxu0 %vm507_vm0, %v2761_v55  ;;  %v1213_v36 = vmul.f32 %v4276_v29, %v1188_v15  ;;  %v1212_v37 = vmul.f32 %v4273_v23, %v1192_v32 }
 0x5f1   : > { %2878 = vmatpush1.bf16.msra.mxu0 %v2877_v44  ;;  %2185 = vmatprep.mubr.f32.mxu0 %v3248_v7  ;;  %v2769_v44 = vld [vmem:[%s4529_s7 + $0xd8] sm:$0xff] }
 0x5f2   : > { %v2374_v52 = vpop.permute.xlu1 %2373  ;;  %v4256_v5 = vpop.permute.xlu0 %2383  ;;  %2880 = vmatprep.subr.bf16.mxu0 %v2879_v14  ;;  %v2831_v40 = vpack.c.bf16 %v1215_v28, %v1213_v36  ;;  %v2833_v55 = vpack.c.bf16 %v1214_v8, %v1212_v37  ;;  %v1220_v28 = vld [vmem:[%s4529_s7] sm:$0xff]  ;;  %v2785_v37 = vld [vmem:[%s4529_s7 + $0x118] sm:$0xff] }
 0x5f3   : > { %v2395_v3 = vsel %vm2389_vm9, %v4256_v5, %v4238_v46  ;;  %v2391_v42 = vsel %vm2389_vm9, %v4238_v46, %v4256_v5  ;;  %v2774_v46 = vld [vmem:[%s4529_s7 + $0xe0] sm:$0xff] }
 0x5f4   : > { %2770 = vmatmul.mubr.msk.f32.vlgmr.msra.gmra.mrb[0].mxu0 %vm507_vm0, %v2766_v60  ;;  %v2408_v21 = vmul.f32 %v2401_v33, %v2391_v42  ;;  %v2724_v60 = vld [vmem:[%s4529_s7 + $0x30] sm:$0xff] }
 0x5f5   : > { %2882 = vmatpush1.bf16.msra.mxu0 %v2881_v2  ;;  %2191 = vmatprep.mubr.f32.mxu0 %v3248_v7  ;;  %v2775_v2 = vld [vmem:[%s4529_s7 + $0xe8] sm:$0xff] }
 0x5f6   : > { %v2382_v25 = vpop.permute.xlu1 %2381  ;;  %v1239_v1 = vpop.permute.xlu0 %1238 }
 0x5f7   : > { %v1244_v13 = vsel %vm1240_vm5, %v4118_v53, %v1239_v1  ;;  %v1248_v49 = vsel %vm1240_vm5, %v1239_v1, %v4118_v53  ;;  %v4317_v53 = vrot.slane %v1203_v18, %v4113_v41  ;;  %v2390_v10 = vsel %vm2389_vm9, %v2374_v52, %v2382_v25 }
 0x5f8   : > { %v1263_v6 = vmul.f32 %v4070_v24, %v1248_v49  ;;  %v1264_v38 = vmul.f32 %v4074_v27, %v1244_v13  ;;  %2771 = vmatmul.mubr.msk.f32.gmra.mrb[2].mxu0 %vm507_vm0, %v2767_v48  ;;  %v2394_v24 = vsel %vm2389_vm9, %v2382_v25, %v2374_v52  ;;  %v2406_v41 = vmul.f32 %v2401_v33, %v2390_v10 }
 0x5f9   : > { %2197 = vmatprep.mubr.f32.mxu0 %v3248_v7  ;;  %v2407_v54 = vmul.f32 %v4317_v53, %v2394_v24  ;;  %v2409_v20 = vmul.f32 %v4317_v53, %v2395_v3 }
 0x5fa   : > { %v2829_v27 = vpack.c.bf16 %v1263_v6, %v1261_v19  ;;  %v1174_v51 = vpop.permute.xlu1 %1173  ;;  %v2233_v63 = vpop.permute.xlu0 %2232  ;;  %v2827_v0 = vpack.c.bf16 %v1264_v38, %v1262_v17  ;;  %v2889_v26 = vpack.c.bf16 %v2408_v21, %v2406_v41 }
 0x5fb   : > { %v2238_v59 = vsel %vm2234_vm7, %v4170_v12, %v2233_v63  ;;  %v2242_v22 = vsel %vm2234_vm7, %v2233_v63, %v4170_v12  ;;  %v2722_v12 = vld [vmem:[%s4529_s7 + $0x20] sm:$0xff]  ;;  %v2887_v61 = vpack.c.bf16 %v2409_v20, %v2407_v54  ;;  %v1222_v63 = vld [vmem:[%s4529_s7 + $0x10] sm:$0xff] }
 0x5fc   : > { %v2257_v43 = vmul.f32 %v4236_v47, %v2238_v59  ;;  %v2258_v16 = vmul.f32 %v4214_v4, %v2242_v22  ;;  %2828 = vmatprep.subr.bf16.mxu1 %v2827_v0  ;;  %2772 = vmatmul.mubr.msk.f32.gmra.mrb[4].mxu0 %vm507_vm0, %v2768_v34  ;;  %v2783_v0 = vld [vmem:[%s4529_s7 + $0x108] sm:$0xff]  ;;  %v1223_v34 = vld [vmem:[%s4529_s7 + $0x18] sm:$0xff] }
 0x5fd   : > { %2830 = vmatpush1.bf16.msra.mxu1 %v2829_v27  ;;  %2203 = vmatprep.mubr.f32.mxu0 %v3248_v7 }
 0x5fe   : > { %v2885_v4 = vpack.c.bf16 %v2257_v43, %v2255_v56  ;;  %v1182_v11 = vpop.permute.xlu1 %1181  ;;  %2832 = vmatprep.subr.bf16.mxu1 %v2831_v40  ;;  %v1176_v47 = vpop.permute.xlu0 %1175  ;;  %v2883_v57 = vpack.c.bf16 %v2258_v16, %v2256_v35  ;;  %v2784_v35 = vld [vmem:[%s4529_s7 + $0x110] sm:$0xff] }
 0x5ff   : > { %v1194_v52 = vsel %vm1187_vm8, %v1182_v11, %v1174_v51  ;;  %v1190_v5 = vsel %vm1187_vm8, %v1174_v51, %v1182_v11  ;;  %v2782_v51 = vld [vmem:[%s4529_s7 + $0x100] sm:$0xff] }
 0x600   : > { %2884 = vmatprep.subr.bf16.mxu0 %v2883_v57  ;;  %2726 = vmatmul.mubr.msk.f32.vlgmr.msra.gmra.mrb[42].mxu1 %vm507_vm0, %v2722_v12  ;;  %v1216_v15 = vmul.f32 %v4273_v23, %v1194_v52  ;;  %v1217_v50 = vmul.f32 %v4276_v29, %v1190_v5 }
 0x601   : > { %2773 = vmatmul.mubr.msk.f32.gmra.mrb[6].mxu0 %vm507_vm0, %v2769_v44  ;;  %2834 = vmatpush1.bf16.msra.mxu1 %v2833_v55 }
 0x602   : > { %2886 = vmatpush1.bf16.msra.mxu0 %v2885_v4  ;;  %v2378_v18 = vpop.permute.xlu1 %2377  ;;  %v2380_v14 = vpop.permute.xlu0 %2379  ;;  %2340 = vmatprep.mubr.f32.mxu0 %v3248_v7 }
 0x603   : > { %2888 = vmatprep.subr.bf16.mxu0 %v2887_v61  ;;  %1352 = vmatprep.mubr.f32.mxu1 %v3248_v7 }
 0x604   : > { %2727 = vmatmul.mubr.msk.f32.gmra.mrb[44].mxu1 %vm507_vm0, %v2723_v62 }
 0x605   : > { %2778 = vmatmul.mubr.msk.f32.vlgmr.msra.gmra.mrb[0].mxu0 %vm507_vm0, %v2774_v46  ;;  %1358 = vmatprep.mubr.f32.mxu1 %v3248_v7 }
 0x606   : > { %2890 = vmatpush1.bf16.msra.mxu0 %v2889_v26  ;;  %v2386_v30 = vpop.permute.xlu1 %2385  ;;  %v1184_v31 = vpop.permute.xlu0 %1183  ;;  %2346 = vmatprep.mubr.f32.mxu0 %v3248_v7 }
 0x607   : > { %v1191_v19 = vsel %vm1187_vm8, %v1176_v47, %v1184_v31  ;;  %v1195_v17 = vsel %vm1187_vm8, %v1184_v31, %v1176_v47  ;;  %v2392_v25 = vsel %vm2389_vm9, %v2378_v18, %v2386_v30  ;;  %v2396_v9 = vsel %vm2389_vm9, %v2386_v30, %v2378_v18 }
 0x608   : > { %v1218_v1 = vmul.f32 %v4273_v23, %v1195_v17  ;;  %v1219_v48 = vmul.f32 %v4276_v29, %v1191_v19  ;;  %2728 = vmatmul.mubr.msk.f32.gmra.mrb[46].mxu1 %vm507_vm0, %v2724_v60  ;;  %v2776_v29 = vld [vmem:[%s4529_s7 + $0xf0] sm:$0xff]  ;;  %v2410_v32 = vmul.f32 %v2401_v33, %v2392_v25  ;;  %v2411_v38 = vmul.f32 %v4317_v53, %v2396_v9 }
 0x609   : > { %2779 = vmatmul.mubr.msk.f32.gmra.mrb[2].mxu0 %vm507_vm0, %v2775_v2  ;;  %1364 = vmatprep.mubr.f32.mxu1 %v3248_v7 }
 0x60a   : > { %v2837_v13 = vpack.c.bf16 %v1218_v1, %v1216_v15  ;;  %v2388_v49 = vpop.permute.xlu0 %2387  ;;  %2352 = vmatprep.mubr.f32.mxu0 %v3248_v7  ;;  %v2835_v23 = vpack.c.bf16 %v1219_v48, %v1217_v50 }
 0x60b   : > { %v2393_v36 = vsel %vm2389_vm9, %v2380_v14, %v2388_v49  ;;  %v2397_v6 = vsel %vm2389_vm9, %v2388_v49, %v2380_v14 }
 0x60c   : > { %v2412_v56 = vmul.f32 %v2401_v33, %v2393_v36  ;;  %v2413_v58 = vmul.f32 %v4317_v53, %v2397_v6  ;;  %2836 = vmatprep.subr.bf16.mxu1 %v2835_v23  ;;  %2729 = vmatmul.mubr.msk.f32.gmra.mrb[48].mxu1 %vm507_vm0, %v2725_v45  ;;  %v1221_v53 = vld [vmem:[%s4529_s7 + $0x8] sm:$0xff] }
 0x60d   : > { %2780 = vmatmul.mubr.msk.f32.gmra.mrb[4].mxu0 %vm507_vm0, %v2776_v29  ;;  %2838 = vmatpush1.bf16.msra.mxu1 %v2837_v13 }
 0x60e   : > { %v2893_v24 = vpack.c.bf16 %v2412_v56, %v2410_v32  ;;  %2358 = vmatprep.mubr.f32.mxu0 %v3248_v7  ;;  %v2891_v27 = vpack.c.bf16 %v2413_v58, %v2411_v38  ;;  %1447 = vmatprep.mubr.f32.mxu1 %v3248_v7 }
 0x610   : > { %2892 = vmatprep.subr.bf16.mxu0 %v2891_v27  ;;  %2730 = vmatmul.mubr.msk.f32.vlgmr.msra.gmra.mrb[42].mxu1 %vm507_vm0, %v1220_v28 }
 0x611   : > { %2781 = vmatmul.mubr.msk.f32.gmra.mrb[6].mxu0 %vm507_vm0, %v2777_v39  ;;  %1453 = vmatprep.mubr.f32.mxu1 %v3248_v7 }
 0x612   : > { %2894 = vmatpush1.bf16.msra.mxu0 %v2893_v24  ;;  %2495 = vmatprep.mubr.f32.mxu0 %v3248_v7 }
 0x614   : > { %2731 = vmatmul.mubr.msk.f32.gmra.mrb[44].mxu1 %vm507_vm0, %v1221_v53 }
 0x615   : > { %2786 = vmatmul.mubr.msk.f32.vlgmr.msra.gmra.mrb[0].mxu0 %vm507_vm0, %v2782_v51  ;;  %1459 = vmatprep.mubr.f32.mxu1 %v3248_v7 }
 0x616   : > { %2501 = vmatprep.mubr.f32.mxu0 %v3248_v7 }
 0x618   : > { %2732 = vmatmul.mubr.msk.f32.gmra.mrb[46].mxu1 %vm507_vm0, %v1222_v63 }
 0x619   : > { %2787 = vmatmul.mubr.msk.f32.gmra.mrb[2].mxu0 %vm507_vm0, %v2783_v0  ;;  %1465 = vmatprep.mubr.f32.mxu1 %v3248_v7 }
 0x61a   : > { %2507 = vmatprep.mubr.f32.mxu0 %v3248_v7 }
 0x61c   : > { %2733 = vmatmul.mubr.msk.f32.gmra.mrb[48].mxu1 %vm507_vm0, %v1223_v34 }
 0x61d   : > { %2788 = vmatmul.mubr.msk.f32.gmra.mrb[4].mxu0 %vm507_vm0, %v2784_v35 }
 0x61e   : > { %2513 = vmatprep.mubr.f32.mxu0 %v3248_v7 }
 0x621   : > { %2789 = vmatmul.mubr.msk.f32.gmra.mrb[6].mxu0 %vm507_vm0, %v2785_v37 }
 0x6e3   : > { %v1449_v59 = vpop.f32.mrb[42].mxu1 }
 0x6e4   : > { %v1451_v22 = vpop.f32.mrb[43].mxu1 }
 0x6e7   : > { %v1455_v3 = vpop.f32.mrb[44].mxu1 }
 0x6e8   : > { %v2497_v43 = vpop.f32.mrb[0].mxu0  ;;  %v1457_v16 = vpop.f32.mrb[45].mxu1 }
 0x6e9   : > { %v2895_v40 = vadd.f32 %v2497_v43, %v1449_v59  ;;  %v2499_v8 = vpop.f32.mrb[1].mxu0 }
 0x6ea   : > { %v2896_v10 = vadd.f32 %v2499_v8, %v1451_v22 }
 0x6eb   : > { %v2528_v54 = vmax.f32 %v2895_v40, 0.0  ;;  %v1461_v12 = vpop.f32.mrb[46].mxu1 }
 0x6ec   : > { %v2529_v33 = vmax.f32 %v2896_v10, 0.0  ;;  %v2503_v4 = vpop.f32.mrb[2].mxu0  ;;  %v1463_v7 = vpop.f32.mrb[47].mxu1 }
 0x6ed   : > { %2536 = vst [vmem:[%s4460_s15] sm:$0xff] %v2528_v54  ;;  %v2897_v11 = vadd.f32 %v2503_v4, %v1455_v3  ;;  %v2505_v47 = vpop.f32.mrb[3].mxu0 }
 0x6ee   : > { %2537 = vst [vmem:[%s4460_s15 + $0x8] sm:$0xff] %v2529_v33  ;;  %v2898_v44 = vadd.f32 %v2505_v47, %v1457_v16 }
 0x6ef   : > { %v2530_v57 = vmax.f32 %v2897_v11, 0.0  ;;  %v1467_v55 = vpop.f32.mrb[48].mxu1 }
 0x6f0   : > { %v2531_v42 = vmax.f32 %v2898_v44, 0.0  ;;  %v2509_v20 = vpop.f32.mrb[4].mxu0  ;;  %v1469_v41 = vpop.f32.mrb[49].mxu1 }
 0x6f1   : > { %2538 = vst [vmem:[%s4460_s15 + $0x10] sm:$0xff] %v2530_v57  ;;  %v2899_v61 = vadd.f32 %v2509_v20, %v1461_v12  ;;  %v2511_v62 = vpop.f32.mrb[5].mxu0 }
 0x6f2   : > { %2539 = vst [vmem:[%s4460_s15 + $0x18] sm:$0xff] %v2531_v42  ;;  %v2900_v21 = vadd.f32 %v2511_v62, %v1463_v7 }
 0x6f3   : > { %v2532_v18 = vmax.f32 %v2899_v61, 0.0 }
 0x6f4   : > { %v2533_v14 = vmax.f32 %v2900_v21, 0.0  ;;  %v2515_v46 = vpop.f32.mrb[6].mxu0 }
 0x6f5   : > { %2540 = vst [vmem:[%s4460_s15 + $0x20] sm:$0xff] %v2532_v18  ;;  %v2901_v26 = vadd.f32 %v2515_v46, %v1467_v55  ;;  %v2517_v52 = vpop.f32.mrb[7].mxu0 }
 0x6f6   : > { %2541 = vst [vmem:[%s4460_s15 + $0x28] sm:$0xff] %v2533_v14  ;;  %v2902_v5 = vadd.f32 %v2517_v52, %v1469_v41 }
 0x6f7   : > { %v2534_v60 = vmax.f32 %v2901_v26, 0.0 }
 0x6f8   : > { %v2535_v30 = vmax.f32 %v2902_v5, 0.0 }
 0x6f9   : > { %2542 = vst [vmem:[%s4460_s15 + $0x30] sm:$0xff] %v2534_v60 }
 0x6fa   : > { %2543 = vst [vmem:[%s4460_s15 + $0x38] sm:$0xff] %v2535_v30 }
 0x6fb   : > { %3180 = shalt.err (!%p3177_p9)
}
 0x6fc   : > { %s3181_s14 = scalar_lea.hbm %s4473_s19, 1024  ;;  %s3185_s18 = scalar_lea.hbm %s4531_s9, 2048 }
 0x6fd   : > { %p3182_p10 = scmp.ne.s32.totalorder %s4473_s19, %s3181_s14  ;;  %p3186_p13 = scmp.lt.u32.totalorder %s4473_s19, %s4531_s9 }
 0x6fe   : > { %p3187_p3 = scmp.lt.u32.totalorder %s3185_s18, %s3181_s14  ;;  %p3189_p4 = scmp.lt.u32.totalorder %s3181_s14, %s4473_s19 }
 0x6ff   : > { %p3183_p1 = pnand %p3182_p10, %p4559_p11 }
 0x700   : > { %p3188_p8 = por %p3187_p3, %p3186_p13 }
 0x701   : > { %p3184_p5 = pneg %p3183_p1 }
 0x702   : > { %p3190_p0 = por %p3189_p4, %p3188_p8 }
 0x704   : > { %p3191_p2 = pnand %p3190_p0, %p3184_p5 }
 0x706   : > { %3194 = shalt.err (!%p3191_p2)
}
 0x707   : > { %s3259_s15 = smov 256  }
 0x708   : > { %2967 = dma.vmem_to_hbm [thread:$0]  (%p4559_p11), %s4475_s20, 1024, %s4473_s19, %s2545_s13, %s3259_s15, %s3259_s15, %s3254_s17  }
 0x709 PF: > { %s4560_s25 = sld [smem:[#allocation17_spill]]  ;;  %s2573_s23 = sand.u32 1, %s3229_s30  }
 0x70a   : > { %p4562_p6 = scmp.ge.s32.totalorder %s3241_s12, 2  ;;  %s2574_s28 = scalar_lea.sflag [#allocation4], %s2573_s23 }
 0x70f   : > { %p4561_p7 = scmp.ne.s32.totalorder %s4560_s25, 0 }
 0x711   : > { %p2981_p12 = pnand %p4562_p6, %p4561_p7 }
 0x713   : > { %3224 = dma.done.wait (!%p2981_p12), %s2574_s28, 1024  }
 0x714   : > { %3226 = vsyncadd (!%p2981_p12), %s2574_s28, 4294966272  ;;  %s4563_s12 = sld [smem:[#allocation15_spill]]  ;;  %s4564_s21 = sld [smem:[#allocation14_spill]] }
 0x715   : > { %s4565_s11 = sld [smem:[#allocation16_spill]]  ;;  %s4566_s30 = smov %s3233_s10 }
 0x71a   : > { %p26_p9 = scmp.ge.s32.totalorder %s4563_s12, 4   ;;  %s4567_s10 = smov %s4564_s21 }
 0x71c   :  { %28 = sbr.rel (!%p26_p9) target bundleno = 11 (0xb), region = 130 }
 0x723   :  { %2579 = vsyncpa [#allocation3], 1 }
 0x724   :  { %2581 = vsyncpa [#allocation3 + $0x1], 1 }
 0x725   :  { %2582 = vsyncpa [#allocation7], 1 }
 0x726   :  { %2584 = vsyncpa [#allocation7 + $0x1], 1 }
 0x727   :  { %2585 = vsyncpa [#allocation4], 1 }
 0x728   :  { %2587 = vsyncpa [#allocation4 + $0x1], 1 }
 0x729   :  { %2588 = vsyncpa [#allocation5], 1 }
 0x72a   :  { %2590 = vsyncpa [#allocation5 + $0x1], 1 }

</bundles_post_ra>
